<compile_context>
chip_gen: v5e
topology: v5e:2x2
jax: 0.10.0
libtpu: 0.0.40
codegen_flags: <defaults>
</compile_context>

<pallas_src>
import functools

import jax
import jax.numpy as jnp
from jax import lax
from jax.experimental import pallas as pl
from jax.experimental.pallas import tpu as pltpu


def _round_up(x, m):
    return ((x + m - 1) // m) * m


def _make_kernel(row_pitch, m_rows):
    """Build the per-image kernel.

    x_ref     : (Mp_pad, Cin)  f32   zero-padded image, spatially flattened (pitch W+2)
    w1_ref    : (9, Cin, P)    bf16  3x3 weights per tap, BN scale folded, lane-padded
    w2_ref    : (P, P)         bf16  1x1 conv weights, lane-padded
    consts_ref: (8, P)         f32   row 0 = BN shift, row 1 = conv2 bias (lane-padded)
    o_ref     : (M, P)         f32   lane-dense output block
    acc_ref   : (M, P)         f32   VMEM scratch accumulator
    """

    def kernel(x_ref, w1_ref, w2_ref, consts_ref, o_ref, acc_ref):
        # 3x3 conv = 9 shifted tap-matmuls accumulated in f32 (MXU, bf16 operands).
        for t in range(9):
            kh, kw = divmod(t, 3)
            off = kh * row_pitch + kw
            xs = x_ref[pl.ds(off, m_rows), :].astype(jnp.bfloat16)
            contrib = jnp.dot(xs, w1_ref[t], preferred_element_type=jnp.float32)
            if t == 0:
                acc_ref[...] = contrib
            else:
                acc_ref[...] += contrib
        # BN shift (scale already folded into w1) + LeakyReLU(0.1), f32 epilogue.
        y = acc_ref[...] + consts_ref[0:1, :]
        y = jnp.where(y >= 0, y, 0.1 * y)
        # 1x1 conv + bias (bf16 operands, f32 accumulation).
        z = jnp.dot(y.astype(jnp.bfloat16), w2_ref[...],
                    preferred_element_type=jnp.float32)
        o_ref[...] = (z + consts_ref[1:2, :]).astype(o_ref.dtype)

    return kernel


def prediction_branch_pallas(x_nchw, params, num_classes):
    """x_nchw: (B, Cin, H, W) float32. Returns (B, 3, H, W, num_classes+5)."""
    B, Cin, H, W = x_nchw.shape
    C1 = 2 * Cin
    C2 = (num_classes + 5) * 3
    P = max(_round_up(C1, 128), _round_up(C2, 128))   # lane-dense channel padding

    row_pitch = W + 2                      # padded-row pitch of the flattened image
    M = H * row_pitch                      # output rows per image (2 junk cols/row, sliced later)
    Mp = (H + 2) * row_pitch               # flattened padded image length
    Mp_pad = _round_up(Mp + 2, 8)          # +2: largest tap offset reaches row Mp+1

    # --- parameter folding / padding -----------------------------------------
    w1 = params["w1"] * params["bn_scale"][0]                     # fold BN scale, (3,3,Cin,C1)
    w1_taps = w1.reshape(9, Cin, C1)                              # tap order t = kh*3 + kw
    w1_taps = jnp.pad(w1_taps, ((0, 0), (0, 0), (0, P - C1))).astype(jnp.bfloat16)
    w2 = jnp.pad(params["w2"], ((0, P - C1), (0, P - C2))).astype(jnp.bfloat16)
    consts = jnp.zeros((8, P), jnp.float32)
    consts = consts.at[0, :C1].set(params["bn_shift"][0])
    consts = consts.at[1, :C2].set(params["b2"][0])

    # --- input glue: NCHW -> NHWC -> zero-pad border -> flatten spatial ------
    x_nhwc = jnp.transpose(x_nchw, (0, 2, 3, 1))                  # (B, H, W, Cin)
    x_pad = jnp.pad(x_nhwc, ((0, 0), (1, 1), (1, 1), (0, 0)))     # (B, H+2, W+2, Cin)
    xf = x_pad.reshape(B, Mp, Cin)
    xf = jnp.pad(xf, ((0, 0), (0, Mp_pad - Mp), (0, 0)))          # (B, Mp_pad, Cin), f32

    kernel = _make_kernel(row_pitch, M)
    out = pl.pallas_call(
        kernel,
        out_shape=jax.ShapeDtypeStruct((B, M, P), jnp.float32),
        grid=(B,),
        in_specs=[
            pl.BlockSpec((None, Mp_pad, Cin), lambda b: (b, 0, 0)),   # image (per step)
            pl.BlockSpec((9, Cin, P), lambda b: (0, 0, 0)),           # w1 taps (resident)
            pl.BlockSpec((P, P), lambda b: (0, 0)),                   # w2 (resident)
            pl.BlockSpec((8, P), lambda b: (0, 0)),                   # shift+bias (resident)
        ],
        out_specs=pl.BlockSpec((None, M, P), lambda b: (b, 0, 0)),
        scratch_shapes=[pltpu.VMEM((M, P), jnp.float32)],
        compiler_params=pltpu.CompilerParams(
            dimension_semantics=("parallel",),
            vmem_limit_bytes=32 * 1024 * 1024,
        ),
    )(xf, w1_taps, w2, consts)

    # --- output glue: drop junk columns / padded lanes, back to NCHW, reshape -
    out_nhwc = out.reshape(B, H, row_pitch, P)[:, :, :W, :C2]     # (B, H, W, C2)
    out_nchw = jnp.transpose(out_nhwc, (0, 3, 1, 2))              # (B, C2, H, W)
    return out_nchw.reshape(B, 3, H, W, num_classes + 5)


def make_params(key, in_channel, num_classes):
    """Deterministic synthetic parameters (shapes per PredictionBranch.__init__)."""
    C1 = 2 * in_channel
    C2 = (num_classes + 5) * 3
    ks = jax.random.split(key, 7)
    w1 = 0.1 * jax.random.normal(ks[0], (3, 3, in_channel, C1), jnp.float32)   # HWIO
    gamma = 1.0 + 0.1 * jax.random.normal(ks[1], (C1,), jnp.float32)
    beta = 0.1 * jax.random.normal(ks[2], (C1,), jnp.float32)
    run_mean = 0.1 * jax.random.normal(ks[3], (C1,), jnp.float32)
    run_var = jnp.abs(jax.random.normal(ks[4], (C1,), jnp.float32)) + 0.5
    eps = 1e-5
    scale = gamma / jnp.sqrt(run_var + eps)
    shift = beta - run_mean * scale
    w2 = 0.1 * jax.random.normal(ks[5], (C1, C2), jnp.float32)
    b2 = 0.1 * jax.random.normal(ks[6], (C2,), jnp.float32)
    return {
        "w1": w1,
        "bn_scale": scale.reshape(1, C1),
        "bn_shift": shift.reshape(1, C1),
        "w2": w2,
        "b2": b2.reshape(1, C2),
    }


def prediction_branch_reference(x_nchw, params, num_classes):
    """Pure-JAX f32 reference (lax.conv) with identical semantics, for verification."""
    B, Cin, H, W = x_nchw.shape
    x_nhwc = jnp.transpose(x_nchw, (0, 2, 3, 1))
    y = lax.conv_general_dilated(
        x_nhwc, params["w1"], window_strides=(1, 1), padding=((1, 1), (1, 1)),
        dimension_numbers=("NHWC", "HWIO", "NHWC"),
    )
    y = y * params["bn_scale"][0] + params["bn_shift"][0]
    y = jnp.where(y >= 0, y, 0.1 * y)
    z = jnp.einsum("bhwc,co->bhwo", y, params["w2"]) + params["b2"][0]
    z_nchw = jnp.transpose(z, (0, 3, 1, 2))
    return z_nchw.reshape(B, 3, H, W, num_classes + 5)


if __name__ == "__main__":
    B, Cin, H, W = 2, 4, 16, 16
    num_classes = 3

    key = jax.random.PRNGKey(0)
    kx, kp = jax.random.split(key)
    x = jax.random.normal(kx, (B, Cin, H, W), jnp.float32)
    params = make_params(kp, Cin, num_classes)

    run = jax.jit(functools.partial(prediction_branch_pallas, num_classes=num_classes))
    out = run(x, params)
    out = jax.block_until_ready(out)

    ref = prediction_branch_reference(x, params, num_classes)
    assert out.shape == (B, 3, H, W, num_classes + 5), out.shape
    # bf16 MXU operands (f32 accumulation) -> loosened tolerance vs f32 reference.
    max_err = float(jnp.max(jnp.abs(out - ref)))
    assert jnp.allclose(out, ref, atol=1e-2, rtol=1e-2), max_err

    print("KERNEL_OK")
</pallas_src>

<mosaic_0001>
module attributes {stable_mosaic.version = 11 : i64} {
  func.func @kernel(%arg0: i32, %arg1: memref<1x328x4xf32, #tpu.memory_space<vmem>>, %arg2: memref<9x4x128xbf16, #tpu.memory_space<vmem>>, %arg3: memref<128x128xbf16, #tpu.memory_space<vmem>>, %arg4: memref<8x128xf32, #tpu.memory_space<vmem>>, %arg5: memref<1x288x128xf32, #tpu.memory_space<vmem>>, %arg6: memref<288x128xf32, #tpu.memory_space<vmem>>) attributes {dimension_semantics = [#tpu.dimension_semantics<parallel>], iteration_bounds = array<i64: 2>, scalar_prefetch = 0 : i64, scratch_operands = 1 : i64, tpu.core_type = #tpu.core_type<tc>, window_params = [{transform_indices = @transform_0, window_bounds = array<i64: 1, 328, 4>}, {pipeline_mode = #tpu.pipeline_mode<synchronous>, transform_indices = @transform_1, window_bounds = array<i64: 9, 4, 128>}, {pipeline_mode = #tpu.pipeline_mode<synchronous>, transform_indices = @transform_2, window_bounds = array<i64: 128, 128>}, {pipeline_mode = #tpu.pipeline_mode<synchronous>, transform_indices = @transform_3, window_bounds = array<i64: 8, 128>}, {transform_indices = @transform_4, window_bounds = array<i64: 1, 288, 128>}]} {
    %c0 = arith.constant 0 : index
    %c0_0 = arith.constant 0 : index
    %c0_1 = arith.constant 0 : index
    %0 = vector.load %arg1[%c0, %c0_0, %c0_1] : memref<1x328x4xf32, #tpu.memory_space<vmem>>, vector<1x288x4xf32>
    %1 = vector.shape_cast %0 : vector<1x288x4xf32> to vector<288x4xf32>
    %2 = arith.truncf %1 : vector<288x4xf32> to vector<288x4xbf16>
    %c0_2 = arith.constant 0 : index
    %c0_3 = arith.constant 0 : index
    %c0_4 = arith.constant 0 : index
    %3 = vector.load %arg2[%c0_2, %c0_3, %c0_4] : memref<9x4x128xbf16, #tpu.memory_space<vmem>>, vector<1x4x128xbf16>
    %4 = vector.shape_cast %3 : vector<1x4x128xbf16> to vector<4x128xbf16>
    %cst = arith.constant dense<0.000000e+00> : vector<288x128xf32>
    %5 = tpu.matmul %2, %4, %cst {dimension_numbers = #tpu.dot_dimension_numbers<[1], [0], [0], [1], [0, 0, 1, 1], [], []>} : vector<288x4xbf16>, vector<4x128xbf16>, vector<288x128xf32> -> vector<288x128xf32>
    %c0_5 = arith.constant 0 : index
    %c0_6 = arith.constant 0 : index
    %6 = vector.load %arg6[%c0_5, %c0_6] : memref<288x128xf32, #tpu.memory_space<vmem>>, vector<288x128xf32>
    tpu.vector_store %arg6[%c0_5, %c0_6], %5 {strides = array<i32>} : memref<288x128xf32, #tpu.memory_space<vmem>>, vector<288x128xf32>,
    %c0_7 = arith.constant 0 : index
    %c1 = arith.constant 1 : index
    %c0_8 = arith.constant 0 : index
    %7 = vector.load %arg1[%c0_7, %c1, %c0_8] : memref<1x328x4xf32, #tpu.memory_space<vmem>>, vector<1x288x4xf32>
    %8 = vector.shape_cast %7 : vector<1x288x4xf32> to vector<288x4xf32>
    %9 = arith.truncf %8 : vector<288x4xf32> to vector<288x4xbf16>
    %c1_9 = arith.constant 1 : index
    %c0_10 = arith.constant 0 : index
    %c0_11 = arith.constant 0 : index
    %10 = vector.load %arg2[%c1_9, %c0_10, %c0_11] : memref<9x4x128xbf16, #tpu.memory_space<vmem>>, vector<1x4x128xbf16>
    %11 = vector.shape_cast %10 : vector<1x4x128xbf16> to vector<4x128xbf16>
    %cst_12 = arith.constant dense<0.000000e+00> : vector<288x128xf32>
    %12 = tpu.matmul %9, %11, %cst_12 {dimension_numbers = #tpu.dot_dimension_numbers<[1], [0], [0], [1], [0, 0, 1, 1], [], []>} : vector<288x4xbf16>, vector<4x128xbf16>, vector<288x128xf32> -> vector<288x128xf32>
    %c0_13 = arith.constant 0 : index
    %c0_14 = arith.constant 0 : index
    %13 = vector.load %arg6[%c0_13, %c0_14] : memref<288x128xf32, #tpu.memory_space<vmem>>, vector<288x128xf32>
    %14 = arith.addf %13, %12 : vector<288x128xf32>
    %c0_15 = arith.constant 0 : index
    %c0_16 = arith.constant 0 : index
    %15 = vector.load %arg6[%c0_15, %c0_16] : memref<288x128xf32, #tpu.memory_space<vmem>>, vector<288x128xf32>
    tpu.vector_store %arg6[%c0_15, %c0_16], %14 {strides = array<i32>} : memref<288x128xf32, #tpu.memory_space<vmem>>, vector<288x128xf32>,
    %c0_17 = arith.constant 0 : index
    %c2 = arith.constant 2 : index
    %c0_18 = arith.constant 0 : index
    %16 = vector.load %arg1[%c0_17, %c2, %c0_18] : memref<1x328x4xf32, #tpu.memory_space<vmem>>, vector<1x288x4xf32>
    %17 = vector.shape_cast %16 : vector<1x288x4xf32> to vector<288x4xf32>
    %18 = arith.truncf %17 : vector<288x4xf32> to vector<288x4xbf16>
    %c2_19 = arith.constant 2 : index
    %c0_20 = arith.constant 0 : index
    %c0_21 = arith.constant 0 : index
    %19 = vector.load %arg2[%c2_19, %c0_20, %c0_21] : memref<9x4x128xbf16, #tpu.memory_space<vmem>>, vector<1x4x128xbf16>
    %20 = vector.shape_cast %19 : vector<1x4x128xbf16> to vector<4x128xbf16>
    %cst_22 = arith.constant dense<0.000000e+00> : vector<288x128xf32>
    %21 = tpu.matmul %18, %20, %cst_22 {dimension_numbers = #tpu.dot_dimension_numbers<[1], [0], [0], [1], [0, 0, 1, 1], [], []>} : vector<288x4xbf16>, vector<4x128xbf16>, vector<288x128xf32> -> vector<288x128xf32>
    %c0_23 = arith.constant 0 : index
    %c0_24 = arith.constant 0 : index
    %22 = vector.load %arg6[%c0_23, %c0_24] : memref<288x128xf32, #tpu.memory_space<vmem>>, vector<288x128xf32>
    %23 = arith.addf %22, %21 : vector<288x128xf32>
    %c0_25 = arith.constant 0 : index
    %c0_26 = arith.constant 0 : index
    %24 = vector.load %arg6[%c0_25, %c0_26] : memref<288x128xf32, #tpu.memory_space<vmem>>, vector<288x128xf32>
    tpu.vector_store %arg6[%c0_25, %c0_26], %23 {strides = array<i32>} : memref<288x128xf32, #tpu.memory_space<vmem>>, vector<288x128xf32>,
    %c0_27 = arith.constant 0 : index
    %c18 = arith.constant 18 : index
    %c0_28 = arith.constant 0 : index
    %25 = vector.load %arg1[%c0_27, %c18, %c0_28] : memref<1x328x4xf32, #tpu.memory_space<vmem>>, vector<1x288x4xf32>
    %26 = vector.shape_cast %25 : vector<1x288x4xf32> to vector<288x4xf32>
    %27 = arith.truncf %26 : vector<288x4xf32> to vector<288x4xbf16>
    %c3 = arith.constant 3 : index
    %c0_29 = arith.constant 0 : index
    %c0_30 = arith.constant 0 : index
    %28 = vector.load %arg2[%c3, %c0_29, %c0_30] : memref<9x4x128xbf16, #tpu.memory_space<vmem>>, vector<1x4x128xbf16>
    %29 = vector.shape_cast %28 : vector<1x4x128xbf16> to vector<4x128xbf16>
    %cst_31 = arith.constant dense<0.000000e+00> : vector<288x128xf32>
    %30 = tpu.matmul %27, %29, %cst_31 {dimension_numbers = #tpu.dot_dimension_numbers<[1], [0], [0], [1], [0, 0, 1, 1], [], []>} : vector<288x4xbf16>, vector<4x128xbf16>, vector<288x128xf32> -> vector<288x128xf32>
    %c0_32 = arith.constant 0 : index
    %c0_33 = arith.constant 0 : index
    %31 = vector.load %arg6[%c0_32, %c0_33] : memref<288x128xf32, #tpu.memory_space<vmem>>, vector<288x128xf32>
    %32 = arith.addf %31, %30 : vector<288x128xf32>
    %c0_34 = arith.constant 0 : index
    %c0_35 = arith.constant 0 : index
    %33 = vector.load %arg6[%c0_34, %c0_35] : memref<288x128xf32, #tpu.memory_space<vmem>>, vector<288x128xf32>
    tpu.vector_store %arg6[%c0_34, %c0_35], %32 {strides = array<i32>} : memref<288x128xf32, #tpu.memory_space<vmem>>, vector<288x128xf32>,
    %c0_36 = arith.constant 0 : index
    %c19 = arith.constant 19 : index
    %c0_37 = arith.constant 0 : index
    %34 = vector.load %arg1[%c0_36, %c19, %c0_37] : memref<1x328x4xf32, #tpu.memory_space<vmem>>, vector<1x288x4xf32>
    %35 = vector.shape_cast %34 : vector<1x288x4xf32> to vector<288x4xf32>
    %36 = arith.truncf %35 : vector<288x4xf32> to vector<288x4xbf16>
    %c4 = arith.constant 4 : index
    %c0_38 = arith.constant 0 : index
    %c0_39 = arith.constant 0 : index
    %37 = vector.load %arg2[%c4, %c0_38, %c0_39] : memref<9x4x128xbf16, #tpu.memory_space<vmem>>, vector<1x4x128xbf16>
    %38 = vector.shape_cast %37 : vector<1x4x128xbf16> to vector<4x128xbf16>
    %cst_40 = arith.constant dense<0.000000e+00> : vector<288x128xf32>
    %39 = tpu.matmul %36, %38, %cst_40 {dimension_numbers = #tpu.dot_dimension_numbers<[1], [0], [0], [1], [0, 0, 1, 1], [], []>} : vector<288x4xbf16>, vector<4x128xbf16>, vector<288x128xf32> -> vector<288x128xf32>
    %c0_41 = arith.constant 0 : index
    %c0_42 = arith.constant 0 : index
    %40 = vector.load %arg6[%c0_41, %c0_42] : memref<288x128xf32, #tpu.memory_space<vmem>>, vector<288x128xf32>
    %41 = arith.addf %40, %39 : vector<288x128xf32>
    %c0_43 = arith.constant 0 : index
    %c0_44 = arith.constant 0 : index
    %42 = vector.load %arg6[%c0_43, %c0_44] : memref<288x128xf32, #tpu.memory_space<vmem>>, vector<288x128xf32>
    tpu.vector_store %arg6[%c0_43, %c0_44], %41 {strides = array<i32>} : memref<288x128xf32, #tpu.memory_space<vmem>>, vector<288x128xf32>,
    %c0_45 = arith.constant 0 : index
    %c20 = arith.constant 20 : index
    %c0_46 = arith.constant 0 : index
    %43 = vector.load %arg1[%c0_45, %c20, %c0_46] : memref<1x328x4xf32, #tpu.memory_space<vmem>>, vector<1x288x4xf32>
    %44 = vector.shape_cast %43 : vector<1x288x4xf32> to vector<288x4xf32>
    %45 = arith.truncf %44 : vector<288x4xf32> to vector<288x4xbf16>
    %c5 = arith.constant 5 : index
    %c0_47 = arith.constant 0 : index
    %c0_48 = arith.constant 0 : index
    %46 = vector.load %arg2[%c5, %c0_47, %c0_48] : memref<9x4x128xbf16, #tpu.memory_space<vmem>>, vector<1x4x128xbf16>
    %47 = vector.shape_cast %46 : vector<1x4x128xbf16> to vector<4x128xbf16>
    %cst_49 = arith.constant dense<0.000000e+00> : vector<288x128xf32>
    %48 = tpu.matmul %45, %47, %cst_49 {dimension_numbers = #tpu.dot_dimension_numbers<[1], [0], [0], [1], [0, 0, 1, 1], [], []>} : vector<288x4xbf16>, vector<4x128xbf16>, vector<288x128xf32> -> vector<288x128xf32>
    %c0_50 = arith.constant 0 : index
    %c0_51 = arith.constant 0 : index
    %49 = vector.load %arg6[%c0_50, %c0_51] : memref<288x128xf32, #tpu.memory_space<vmem>>, vector<288x128xf32>
    %50 = arith.addf %49, %48 : vector<288x128xf32>
    %c0_52 = arith.constant 0 : index
    %c0_53 = arith.constant 0 : index
    %51 = vector.load %arg6[%c0_52, %c0_53] : memref<288x128xf32, #tpu.memory_space<vmem>>, vector<288x128xf32>
    tpu.vector_store %arg6[%c0_52, %c0_53], %50 {strides = array<i32>} : memref<288x128xf32, #tpu.memory_space<vmem>>, vector<288x128xf32>,
    %c0_54 = arith.constant 0 : index
    %c36 = arith.constant 36 : index
    %c0_55 = arith.constant 0 : index
    %52 = vector.load %arg1[%c0_54, %c36, %c0_55] : memref<1x328x4xf32, #tpu.memory_space<vmem>>, vector<1x288x4xf32>
    %53 = vector.shape_cast %52 : vector<1x288x4xf32> to vector<288x4xf32>
    %54 = arith.truncf %53 : vector<288x4xf32> to vector<288x4xbf16>
    %c6 = arith.constant 6 : index
    %c0_56 = arith.constant 0 : index
    %c0_57 = arith.constant 0 : index
    %55 = vector.load %arg2[%c6, %c0_56, %c0_57] : memref<9x4x128xbf16, #tpu.memory_space<vmem>>, vector<1x4x128xbf16>
    %56 = vector.shape_cast %55 : vector<1x4x128xbf16> to vector<4x128xbf16>
    %cst_58 = arith.constant dense<0.000000e+00> : vector<288x128xf32>
    %57 = tpu.matmul %54, %56, %cst_58 {dimension_numbers = #tpu.dot_dimension_numbers<[1], [0], [0], [1], [0, 0, 1, 1], [], []>} : vector<288x4xbf16>, vector<4x128xbf16>, vector<288x128xf32> -> vector<288x128xf32>
    %c0_59 = arith.constant 0 : index
    %c0_60 = arith.constant 0 : index
    %58 = vector.load %arg6[%c0_59, %c0_60] : memref<288x128xf32, #tpu.memory_space<vmem>>, vector<288x128xf32>
    %59 = arith.addf %58, %57 : vector<288x128xf32>
    %c0_61 = arith.constant 0 : index
    %c0_62 = arith.constant 0 : index
    %60 = vector.load %arg6[%c0_61, %c0_62] : memref<288x128xf32, #tpu.memory_space<vmem>>, vector<288x128xf32>
    tpu.vector_store %arg6[%c0_61, %c0_62], %59 {strides = array<i32>} : memref<288x128xf32, #tpu.memory_space<vmem>>, vector<288x128xf32>,
    %c0_63 = arith.constant 0 : index
    %c37 = arith.constant 37 : index
    %c0_64 = arith.constant 0 : index
    %61 = vector.load %arg1[%c0_63, %c37, %c0_64] : memref<1x328x4xf32, #tpu.memory_space<vmem>>, vector<1x288x4xf32>
    %62 = vector.shape_cast %61 : vector<1x288x4xf32> to vector<288x4xf32>
    %63 = arith.truncf %62 : vector<288x4xf32> to vector<288x4xbf16>
    %c7 = arith.constant 7 : index
    %c0_65 = arith.constant 0 : index
    %c0_66 = arith.constant 0 : index
    %64 = vector.load %arg2[%c7, %c0_65, %c0_66] : memref<9x4x128xbf16, #tpu.memory_space<vmem>>, vector<1x4x128xbf16>
    %65 = vector.shape_cast %64 : vector<1x4x128xbf16> to vector<4x128xbf16>
    %cst_67 = arith.constant dense<0.000000e+00> : vector<288x128xf32>
    %66 = tpu.matmul %63, %65, %cst_67 {dimension_numbers = #tpu.dot_dimension_numbers<[1], [0], [0], [1], [0, 0, 1, 1], [], []>} : vector<288x4xbf16>, vector<4x128xbf16>, vector<288x128xf32> -> vector<288x128xf32>
    %c0_68 = arith.constant 0 : index
    %c0_69 = arith.constant 0 : index
    %67 = vector.load %arg6[%c0_68, %c0_69] : memref<288x128xf32, #tpu.memory_space<vmem>>, vector<288x128xf32>
    %68 = arith.addf %67, %66 : vector<288x128xf32>
    %c0_70 = arith.constant 0 : index
    %c0_71 = arith.constant 0 : index
    %69 = vector.load %arg6[%c0_70, %c0_71] : memref<288x128xf32, #tpu.memory_space<vmem>>, vector<288x128xf32>
    tpu.vector_store %arg6[%c0_70, %c0_71], %68 {strides = array<i32>} : memref<288x128xf32, #tpu.memory_space<vmem>>, vector<288x128xf32>,
    %c0_72 = arith.constant 0 : index
    %c38 = arith.constant 38 : index
    %c0_73 = arith.constant 0 : index
    %70 = vector.load %arg1[%c0_72, %c38, %c0_73] : memref<1x328x4xf32, #tpu.memory_space<vmem>>, vector<1x288x4xf32>
    %71 = vector.shape_cast %70 : vector<1x288x4xf32> to vector<288x4xf32>
    %72 = arith.truncf %71 : vector<288x4xf32> to vector<288x4xbf16>
    %c8 = arith.constant 8 : index
    %c0_74 = arith.constant 0 : index
    %c0_75 = arith.constant 0 : index
    %73 = vector.load %arg2[%c8, %c0_74, %c0_75] : memref<9x4x128xbf16, #tpu.memory_space<vmem>>, vector<1x4x128xbf16>
    %74 = vector.shape_cast %73 : vector<1x4x128xbf16> to vector<4x128xbf16>
    %cst_76 = arith.constant dense<0.000000e+00> : vector<288x128xf32>
    %75 = tpu.matmul %72, %74, %cst_76 {dimension_numbers = #tpu.dot_dimension_numbers<[1], [0], [0], [1], [0, 0, 1, 1], [], []>} : vector<288x4xbf16>, vector<4x128xbf16>, vector<288x128xf32> -> vector<288x128xf32>
    %c0_77 = arith.constant 0 : index
    %c0_78 = arith.constant 0 : index
    %76 = vector.load %arg6[%c0_77, %c0_78] : memref<288x128xf32, #tpu.memory_space<vmem>>, vector<288x128xf32>
    %77 = arith.addf %76, %75 : vector<288x128xf32>
    %c0_79 = arith.constant 0 : index
    %c0_80 = arith.constant 0 : index
    %78 = vector.load %arg6[%c0_79, %c0_80] : memref<288x128xf32, #tpu.memory_space<vmem>>, vector<288x128xf32>
    tpu.vector_store %arg6[%c0_79, %c0_80], %77 {strides = array<i32>} : memref<288x128xf32, #tpu.memory_space<vmem>>, vector<288x128xf32>,
    %c0_81 = arith.constant 0 : index
    %c0_82 = arith.constant 0 : index
    %79 = vector.load %arg6[%c0_81, %c0_82] : memref<288x128xf32, #tpu.memory_space<vmem>>, vector<288x128xf32>
    %c0_83 = arith.constant 0 : index
    %c0_84 = arith.constant 0 : index
    %80 = vector.load %arg4[%c0_83, %c0_84] : memref<8x128xf32, #tpu.memory_space<vmem>>, vector<1x128xf32>
    %81 = vector.broadcast %80 : vector<1x128xf32> to vector<288x128xf32>
    %82 = arith.addf %79, %81 : vector<288x128xf32>
    %cst_85 = arith.constant 0.000000e+00 : f32
    %83 = vector.broadcast %cst_85 : f32 to vector<288x128xf32>
    %84 = arith.cmpf oge, %82, %83 : vector<288x128xf32>
    %cst_86 = arith.constant 1.000000e-01 : f32
    %85 = vector.broadcast %cst_86 : f32 to vector<288x128xf32>
    %86 = arith.mulf %85, %82 : vector<288x128xf32>
    %87 = arith.select %84, %82, %86 : vector<288x128xi1>, vector<288x128xf32>
    %88 = arith.truncf %87 : vector<288x128xf32> to vector<288x128xbf16>
    %c0_87 = arith.constant 0 : index
    %c0_88 = arith.constant 0 : index
    %89 = vector.load %arg3[%c0_87, %c0_88] : memref<128x128xbf16, #tpu.memory_space<vmem>>, vector<128x128xbf16>
    %cst_89 = arith.constant dense<0.000000e+00> : vector<288x128xf32>
    %90 = tpu.matmul %88, %89, %cst_89 {dimension_numbers = #tpu.dot_dimension_numbers<[1], [0], [0], [1], [0, 0, 1, 1], [], []>} : vector<288x128xbf16>, vector<128x128xbf16>, vector<288x128xf32> -> vector<288x128xf32>
    %c1_90 = arith.constant 1 : index
    %c0_91 = arith.constant 0 : index
    %91 = vector.load %arg4[%c1_90, %c0_91] : memref<8x128xf32, #tpu.memory_space<vmem>>, vector<1x128xf32>
    %92 = vector.broadcast %91 : vector<1x128xf32> to vector<288x128xf32>
    %93 = arith.addf %90, %92 : vector<288x128xf32>
    %c0_92 = arith.constant 0 : index
    %c0_93 = arith.constant 0 : index
    %c0_94 = arith.constant 0 : index
    %94 = vector.load %arg5[%c0_92, %c0_93, %c0_94] : memref<1x288x128xf32, #tpu.memory_space<vmem>>, vector<1x288x128xf32>
    %95 = vector.shape_cast %94 : vector<1x288x128xf32> to vector<288x128xf32>
    %96 = vector.shape_cast %93 : vector<288x128xf32> to vector<1x288x128xf32>
    tpu.vector_store %arg5[%c0_92, %c0_93, %c0_94], %96 {strides = array<i32>} : memref<1x288x128xf32, #tpu.memory_space<vmem>>, vector<1x288x128xf32>,
    return
  }
  func.func @transform_0(%arg0: i32) -> (i32, i32, i32) {
    %c0_i32 = arith.constant 0 : i32
    %c0_i32_0 = arith.constant 0 : i32
    %c0_i32_1 = arith.constant 0 : i32
    return %arg0, %c0_i32, %c0_i32_0 : i32, i32, i32
  }
  func.func @transform_1(%arg0: i32) -> (i32, i32, i32) {
    %c0_i32 = arith.constant 0 : i32
    %c0_i32_0 = arith.constant 0 : i32
    %c0_i32_1 = arith.constant 0 : i32
    %c0_i32_2 = arith.constant 0 : i32
    return %c0_i32, %c0_i32_0, %c0_i32_1 : i32, i32, i32
  }
  func.func @transform_2(%arg0: i32) -> (i32, i32) {
    %c0_i32 = arith.constant 0 : i32
    %c0_i32_0 = arith.constant 0 : i32
    %c0_i32_1 = arith.constant 0 : i32
    return %c0_i32, %c0_i32_0 : i32, i32
  }
  func.func @transform_3(%arg0: i32) -> (i32, i32) {
    %c0_i32 = arith.constant 0 : i32
    %c0_i32_0 = arith.constant 0 : i32
    %c0_i32_1 = arith.constant 0 : i32
    return %c0_i32, %c0_i32_0 : i32, i32
  }
  func.func @transform_4(%arg0: i32) -> (i32, i32, i32) {
    %c0_i32 = arith.constant 0 : i32
    %c0_i32_0 = arith.constant 0 : i32
    %c0_i32_1 = arith.constant 0 : i32
    return %arg0, %c0_i32, %c0_i32_0 : i32, i32, i32
  }
}

</mosaic_0001>

<bundles_post_ra>
// kernel: prediction_branch_pallas.1
= control target key start
LH: loop header
LB: loop body
LE: loop exit
PB: predicated region body
PF: predicated region fallthrough
CT: control target
= control target key end

     0   :  { %s3731_s15 = smov 0   ;;  %s4643_s0 = inlined_call_operand.vmem [shape: f32[2,328,4], index: 0, kind: input, shape index: {}]   ;;  %s4644_s1 = inlined_call_operand.vmem [shape: bf16[9,4,128], index: 1, kind: input, shape index: {}]   ;;  %s4645_s2 = inlined_call_operand.vmem [shape: bf16[128,128], index: 2, kind: input, shape index: {}]   ;;  %s4646_s3 = inlined_call_operand.vmem [shape: f32[8,128], index: 3, kind: input, shape index: {}]   ;;  %s4647_s4 = inlined_call_operand.vmem [shape: f32[2,288,128], index: 4, kind: output, shape index: {}]  }
   0x1 LB: > { %s3464_s16 = sadd.s32 4294967295, %s3704_s15   ;;  %p3468_p0 = scmp.ge.s32.totalorder %s3704_s15, 1  ;;  %s3704_s15 = sphi %s3731_s15, %s14_s15  }
   0x2   : > { %p162_p1 = scmp.lt.s32.totalorder %s3704_s15, 3 }
   0x4   : > { %p163_p2 = pnand %p3468_p0, %p162_p1 }
   0x6   : > { %166 = sbr.rel (%p163_p2) target bundleno = 1014 (0x3f6), region = 36 }
   0xb   : > { %v253_v0 = vld [vmem:[%s4644_s1] sm:$0x3]  ;;  %vm309_vm0 = vcmask 1041408   ;;  %v3489_v1 = vld [vmem:[%s4644_s1 + $0x2] sm:$0x3]  ;;  %p188_p3 = scmp.lt.s32.totalorder %s3464_s16, 1 }
   0xc   : > { %v311_v2 = vsel %vm309_vm0, %v253_v0, 0  ;;  %v559_v3 = vsel %vm309_vm0, %v3489_v1, 0  ;;  %v3508_v4 = vld [vmem:[%s4644_s1 + $0x4] sm:$0x3]  ;;  %v3527_v6 = vld [vmem:[%s4644_s1 + $0x6] sm:$0x3] }
   0xd   : > { %3683 = vmatpush.bf16.msra.mxu2 %v311_v2  ;;  %3684 = vmatpush.bf16.msra.mxu3 %v559_v3  ;;  %s4661_s16 = smov (!%p188_p3, %s3464_s16), 1  ;;  %v879_v5 = vsel %vm309_vm0, %v3508_v4, 0  ;;  %v3546_v7 = vld [vmem:[%s4644_s1 + $0x8] sm:$0x3]  ;;  %v1199_v8 = vsel %vm309_vm0, %v3527_v6, 0  ;;  %vm254_vm1 = vcmask 31744  }
   0xe   : > { %320 = vmatpush.bf16.msra.mxu0 %v311_v2  ;;  %568 = vmatpush.bf16.msra.mxu1 %v559_v3  ;;  %v1519_v9 = vsel %vm309_vm0, %v3546_v7, 0  ;;  %s3685_s27 = smul.u32 328, %s4661_s16 }
  0x10   : > { %s3765_s30 = scalar_lea.vmem %s4643_s0, %s3685_s27 }
  0x11   : > { %888 = vmatpush.bf16.msrb.mxu2 %v879_v5  ;;  %1208 = vmatpush.bf16.msrb.mxu3 %v1199_v8  ;;  %v217_v10 = vld [vmem:[%s3765_s30 + $0x90] sm:$0xff]  ;;  %v218_v11 = vld [vmem:[%s3765_s30 + $0x98] sm:$0xff]  ;;  %v199_v15 = vld [vmem:[%s3765_s30] sm:$0xff] }
  0x12   : > { %1528 = vmatpush.bf16.msrb.mxu0 %v1519_v9  ;;  %v466_v12 = vld [vmem:[%s3765_s30 + $0x91] sm:$0xff]  ;;  %v244_v13 = vpack.c.bf16 %v218_v11, %v217_v10  ;;  %v467_v14 = vld [vmem:[%s3765_s30 + $0x99] sm:$0xff]  ;;  %v200_v16 = vld [vmem:[%s3765_s30 + $0x8] sm:$0xff] }
  0x13   : > { %v493_v17 = vpack.c.bf16 %v467_v14, %v466_v12  ;;  %v235_v18 = vpack.c.bf16 %v200_v16, %v199_v15  ;;  %v448_v19 = vld [vmem:[%s3765_s30 + $0x1] sm:$0xff]  ;;  %v449_v20 = vld [vmem:[%s3765_s30 + $0x9] sm:$0xff]  ;;  %v202_v27 = vld [vmem:[%s3765_s30 + $0x18] sm:$0xff] }
  0x14   : > { %3480 = vmatmul.msk.bf16.vlgmr.msra.gmra.mxu2 %vm254_vm1, %v244_v13  ;;  %v484_v21 = vpack.c.bf16 %v449_v20, %v448_v19  ;;  %v219_v22 = vld [vmem:[%s3765_s30 + $0xa0] sm:$0xff]  ;;  %v220_v23 = vld [vmem:[%s3765_s30 + $0xa8] sm:$0xff]  ;;  %v201_v26 = vld [vmem:[%s3765_s30 + $0x10] sm:$0xff] }
  0x15   : > { %3499 = vmatmul.msk.bf16.vlgmr.msra.gmra.mxu3 %vm254_vm1, %v493_v17  ;;  %3471 = vmatmul.msk.bf16.vlgmr.msra.gmra.mxu0 %vm254_vm1, %v235_v18  ;;  %v468_v24 = vld [vmem:[%s3765_s30 + $0xa1] sm:$0xff]  ;;  %v469_v25 = vld [vmem:[%s3765_s30 + $0xa9] sm:$0xff]  ;;  %v450_v28 = vld [vmem:[%s3765_s30 + $0x11] sm:$0xff]  ;;  %v245_v30 = vpack.c.bf16 %v220_v23, %v219_v22  ;;  %v236_v32 = vpack.c.bf16 %v202_v27, %v201_v26 }
  0x16   : > { %3490 = vmatmul.msk.bf16.vlgmr.msra.gmra.mxu1 %vm254_vm1, %v484_v21  ;;  %v451_v29 = vld [vmem:[%s3765_s30 + $0x19] sm:$0xff]  ;;  %v494_v31 = vpack.c.bf16 %v469_v25, %v468_v24  ;;  %v221_v34 = vld [vmem:[%s3765_s30 + $0xb0] sm:$0xff]  ;;  %v204_v39 = vld [vmem:[%s3765_s30 + $0x28] sm:$0xff] }
  0x17   : > { %v485_v33 = vpack.c.bf16 %v451_v29, %v450_v28  ;;  %v222_v35 = vld [vmem:[%s3765_s30 + $0xb8] sm:$0xff]  ;;  %v203_v38 = vld [vmem:[%s3765_s30 + $0x20] sm:$0xff]  ;;  %v453_v41 = vld [vmem:[%s3765_s30 + $0x29] sm:$0xff] }
  0x18   : > { %v470_v36 = vld [vmem:[%s3765_s30 + $0xb1] sm:$0xff]  ;;  %v471_v37 = vld [vmem:[%s3765_s30 + $0xb9] sm:$0xff]  ;;  %v452_v40 = vld [vmem:[%s3765_s30 + $0x21] sm:$0xff]  ;;  %v246_v42 = vpack.c.bf16 %v222_v35, %v221_v34  ;;  %v237_v44 = vpack.c.bf16 %v204_v39, %v203_v38 }
  0x19   : > { %v495_v43 = vpack.c.bf16 %v471_v37, %v470_v36  ;;  %v486_v45 = vpack.c.bf16 %v453_v41, %v452_v40  ;;  %v223_v46 = vld [vmem:[%s3765_s30 + $0xc0] sm:$0xff]  ;;  %v224_v47 = vld [vmem:[%s3765_s30 + $0xc8] sm:$0xff]  ;;  %v205_v50 = vld [vmem:[%s3765_s30 + $0x30] sm:$0xff] }
  0x1a   : > { %v472_v48 = vld [vmem:[%s3765_s30 + $0xc1] sm:$0xff]  ;;  %v473_v49 = vld [vmem:[%s3765_s30 + $0xc9] sm:$0xff]  ;;  %v206_v51 = vld [vmem:[%s3765_s30 + $0x38] sm:$0xff]  ;;  %v247_v54 = vpack.c.bf16 %v224_v47, %v223_v46 }
  0x1b   : > { %v454_v52 = vld [vmem:[%s3765_s30 + $0x31] sm:$0xff]  ;;  %v455_v53 = vld [vmem:[%s3765_s30 + $0x39] sm:$0xff]  ;;  %v496_v55 = vpack.c.bf16 %v473_v49, %v472_v48  ;;  %v238_v56 = vpack.c.bf16 %v206_v51, %v205_v50  ;;  %v208_v63 = vld [vmem:[%s3765_s30 + $0x48] sm:$0xff] }
  0x1c   : > { %v487_v57 = vpack.c.bf16 %v455_v53, %v454_v52  ;;  %v225_v58 = vld [vmem:[%s3765_s30 + $0xd0] sm:$0xff]  ;;  %v226_v59 = vld [vmem:[%s3765_s30 + $0xd8] sm:$0xff]  ;;  %v207_v62 = vld [vmem:[%s3765_s30 + $0x40] sm:$0xff] }
  0x1d   : > { %v474_v60 = vld [vmem:[%s3765_s30 + $0xd1] sm:$0xff]  ;;  %v475_v61 = vld [vmem:[%s3765_s30 + $0xd9] sm:$0xff]  ;;  %v456_v0 = vld [vmem:[%s3765_s30 + $0x41] sm:$0xff]  ;;  %v248_v2 = vpack.c.bf16 %v226_v59, %v225_v58  ;;  %v239_v4 = vpack.c.bf16 %v208_v63, %v207_v62 }
  0x1e   : > { %v457_v1 = vld [vmem:[%s3765_s30 + $0x49] sm:$0xff]  ;;  %v497_v3 = vpack.c.bf16 %v475_v61, %v474_v60  ;;  %v227_v6 = vld [vmem:[%s3765_s30 + $0xe0] sm:$0xff]  ;;  %v210_v11 = vld [vmem:[%s3765_s30 + $0x58] sm:$0xff] }
  0x1f   : > { %v488_v5 = vpack.c.bf16 %v457_v1, %v456_v0  ;;  %v228_v7 = vld [vmem:[%s3765_s30 + $0xe8] sm:$0xff]  ;;  %v209_v10 = vld [vmem:[%s3765_s30 + $0x50] sm:$0xff]  ;;  %v459_v13 = vld [vmem:[%s3765_s30 + $0x59] sm:$0xff] }
  0x20   : > { %v476_v8 = vld [vmem:[%s3765_s30 + $0xe1] sm:$0xff]  ;;  %v477_v9 = vld [vmem:[%s3765_s30 + $0xe9] sm:$0xff]  ;;  %v458_v12 = vld [vmem:[%s3765_s30 + $0x51] sm:$0xff]  ;;  %v249_v14 = vpack.c.bf16 %v228_v7, %v227_v6  ;;  %v240_v16 = vpack.c.bf16 %v210_v11, %v209_v10 }
  0x21   : > { %v498_v15 = vpack.c.bf16 %v477_v9, %v476_v8  ;;  %v489_v17 = vpack.c.bf16 %v459_v13, %v458_v12  ;;  %v229_v18 = vld [vmem:[%s3765_s30 + $0xf0] sm:$0xff]  ;;  %v230_v19 = vld [vmem:[%s3765_s30 + $0xf8] sm:$0xff]  ;;  %v211_v22 = vld [vmem:[%s3765_s30 + $0x60] sm:$0xff] }
  0x22   : > { %v478_v20 = vld [vmem:[%s3765_s30 + $0xf1] sm:$0xff]  ;;  %v479_v21 = vld [vmem:[%s3765_s30 + $0xf9] sm:$0xff]  ;;  %v212_v23 = vld [vmem:[%s3765_s30 + $0x68] sm:$0xff]  ;;  %v250_v26 = vpack.c.bf16 %v230_v19, %v229_v18 }
  0x23   : > { %v460_v24 = vld [vmem:[%s3765_s30 + $0x61] sm:$0xff]  ;;  %v461_v25 = vld [vmem:[%s3765_s30 + $0x69] sm:$0xff]  ;;  %v499_v27 = vpack.c.bf16 %v479_v21, %v478_v20  ;;  %v241_v28 = vpack.c.bf16 %v212_v23, %v211_v22  ;;  %v214_v35 = vld [vmem:[%s3765_s30 + $0x78] sm:$0xff] }
  0x24   : > { %3481 = vmatmul.msk.bf16.gmra.mxu2 %vm254_vm1, %v245_v30  ;;  %v490_v29 = vpack.c.bf16 %v461_v25, %v460_v24  ;;  %v231_v30 = vld [vmem:[%s3765_s30 + $0x100] sm:$0xff]  ;;  %v213_v34 = vld [vmem:[%s3765_s30 + $0x70] sm:$0xff]  ;;  %v3565_v46 = vld [vmem:[%s4644_s1 + $0xa] sm:$0x3] }
  0x25   : > { %3500 = vmatmul.msk.bf16.gmra.mxu3 %vm254_vm1, %v494_v31  ;;  %3472 = vmatmul.msk.bf16.gmra.mxu0 %vm254_vm1, %v236_v32  ;;  %v232_v31 = vld [vmem:[%s3765_s30 + $0x108] sm:$0xff]  ;;  %v462_v36 = vld [vmem:[%s3765_s30 + $0x71] sm:$0xff]  ;;  %v463_v37 = vld [vmem:[%s3765_s30 + $0x79] sm:$0xff]  ;;  %v242_v40 = vpack.c.bf16 %v214_v35, %v213_v34  ;;  %v1839_v51 = vsel %vm309_vm0, %v3565_v46, 0 }
  0x26   : > { %3491 = vmatmul.msk.bf16.gmra.mxu1 %vm254_vm1, %v485_v33  ;;  %v480_v32 = vld [vmem:[%s3765_s30 + $0x101] sm:$0xff]  ;;  %v481_v33 = vld [vmem:[%s3765_s30 + $0x109] sm:$0xff]  ;;  %v251_v38 = vpack.c.bf16 %v232_v31, %v231_v30  ;;  %v491_v41 = vpack.c.bf16 %v463_v37, %v462_v36  ;;  %v234_v49 = vld [vmem:[%s3765_s30 + $0x118] sm:$0xff] }
  0x27   : > { %v500_v39 = vpack.c.bf16 %v481_v33, %v480_v32  ;;  %v3622_v47 = vld [vmem:[%s4644_s1 + $0x10] sm:$0x3]  ;;  %v483_v53 = vld [vmem:[%s3765_s30 + $0x119] sm:$0xff]  ;;  %1848 = vmatpush.bf16.msrb.mxu1 %v1839_v51  ;;  %v768_v7 = vld [vmem:[%s3765_s30 + $0x2] sm:$0xff] }
  0x28   : > { %v233_v48 = vld [vmem:[%s3765_s30 + $0x110] sm:$0xff]  ;;  %v2799_v52 = vsel %vm309_vm0, %v3622_v47, 0  ;;  %v1089_v10 = vld [vmem:[%s3765_s30 + $0x1a] sm:$0xff]  ;;  %v1090_v31 = vld [vmem:[%s3765_s30 + $0x22] sm:$0xff] }
  0x29   : > { %v482_v50 = vld [vmem:[%s3765_s30 + $0x111] sm:$0xff]  ;;  %2808 = vmatpush.bf16.msra.mxu0 %v2799_v52  ;;  %v252_v58 = vpack.c.bf16 %v234_v49, %v233_v48  ;;  %v1409_v12 = vld [vmem:[%s3765_s30 + $0x1b] sm:$0xff]  ;;  %v1410_v33 = vld [vmem:[%s3765_s30 + $0x23] sm:$0xff] }
  0x2a   : > { %v501_v59 = vpack.c.bf16 %v483_v53, %v482_v50  ;;  %v769_v8 = vld [vmem:[%s3765_s30 + $0xa] sm:$0xff]  ;;  %v1088_v9 = vld [vmem:[%s3765_s30 + $0x12] sm:$0xff]  ;;  %v1093_v53 = vld [vmem:[%s3765_s30 + $0x3a] sm:$0xff] }
  0x2b   : > { %v1408_v11 = vld [vmem:[%s3765_s30 + $0x13] sm:$0xff]  ;;  %v1124_v19 = vpack.c.bf16 %v1089_v10, %v1088_v9  ;;  %v1091_v32 = vld [vmem:[%s3765_s30 + $0x2a] sm:$0xff] }
  0x2c   : > { %v1444_v20 = vpack.c.bf16 %v1409_v12, %v1408_v11  ;;  %v1411_v34 = vld [vmem:[%s3765_s30 + $0x2b] sm:$0xff]  ;;  %v1094_v12 = vld [vmem:[%s3765_s30 + $0x42] sm:$0xff] }
  0x2d   : > { %v1730_v36 = vld [vmem:[%s3765_s30 + $0x24] sm:$0xff]  ;;  %v1731_v37 = vld [vmem:[%s3765_s30 + $0x2c] sm:$0xff] }
  0x2e   : > { %v1092_v52 = vld [vmem:[%s3765_s30 + $0x32] sm:$0xff] }
  0x34   : > { %3482 = vmatmul.msk.bf16.gmra.mxu2 %vm254_vm1, %v246_v42  ;;  %v3584_v42 = vld [vmem:[%s4644_s1 + $0xc] sm:$0x3] }
  0x35   : > { %3501 = vmatmul.msk.bf16.gmra.mxu3 %vm254_vm1, %v495_v43  ;;  %3473 = vmatmul.msk.bf16.gmra.mxu0 %vm254_vm1, %v237_v44  ;;  %v3603_v43 = vld [vmem:[%s4644_s1 + $0xe] sm:$0x3]  ;;  %v2159_v44 = vsel %vm309_vm0, %v3584_v42, 0 }
  0x36   : > { %3492 = vmatmul.msk.bf16.gmra.mxu1 %vm254_vm1, %v486_v45  ;;  %v2479_v45 = vsel %vm309_vm0, %v3603_v43, 0  ;;  %2168 = vmatpush.bf16.msra.mxu2 %v2159_v44  ;;  %v3925_v43 = vpack.c.bf16 %v1731_v37, %v1730_v36  ;;  %v1096_v37 = vld [vmem:[%s3765_s30 + $0x52] sm:$0xff] }
  0x37   : > { %2488 = vmatpush.bf16.msra.mxu3 %v2479_v45 }
  0x44   : > { %3483 = vmatmul.msk.bf16.gmra.mxu2 %vm254_vm1, %v247_v54  ;;  %v215_v54 = vld [vmem:[%s3765_s30 + $0x80] sm:$0xff] }
  0x45   : > { %3502 = vmatmul.msk.bf16.gmra.mxu3 %vm254_vm1, %v496_v55  ;;  %3474 = vmatmul.msk.bf16.gmra.mxu0 %vm254_vm1, %v238_v56  ;;  %v216_v55 = vld [vmem:[%s3765_s30 + $0x88] sm:$0xff] }
  0x46   : > { %3493 = vmatmul.msk.bf16.gmra.mxu1 %vm254_vm1, %v487_v57  ;;  %v464_v56 = vld [vmem:[%s3765_s30 + $0x81] sm:$0xff]  ;;  %v465_v57 = vld [vmem:[%s3765_s30 + $0x89] sm:$0xff]  ;;  %v243_v60 = vpack.c.bf16 %v216_v55, %v215_v54  ;;  %v1412_v54 = vld [vmem:[%s3765_s30 + $0x33] sm:$0xff] }
  0x47   : > { %v492_v62 = vpack.c.bf16 %v465_v57, %v464_v56  ;;  %v1413_v55 = vld [vmem:[%s3765_s30 + $0x3b] sm:$0xff] }
  0x48   : > { %v1732_v57 = vld [vmem:[%s3765_s30 + $0x34] sm:$0xff] }
  0x54   : > { %3484 = vmatmul.msk.bf16.gmra.mxu2 %vm254_vm1, %v248_v2 }
  0x55   : > { %3503 = vmatmul.msk.bf16.gmra.mxu3 %vm254_vm1, %v497_v3  ;;  %3475 = vmatmul.msk.bf16.gmra.mxu0 %vm254_vm1, %v239_v4 }
  0x56   : > { %3494 = vmatmul.msk.bf16.gmra.mxu1 %vm254_vm1, %v488_v5 }
  0x64   : > { %3485 = vmatmul.msk.bf16.gmra.mxu2 %vm254_vm1, %v249_v14  ;;  %v1728_v14 = vld [vmem:[%s3765_s30 + $0x14] sm:$0xff] }
  0x65   : > { %3504 = vmatmul.msk.bf16.gmra.mxu3 %vm254_vm1, %v498_v15  ;;  %3476 = vmatmul.msk.bf16.gmra.mxu0 %vm254_vm1, %v240_v16  ;;  %v1729_v15 = vld [vmem:[%s3765_s30 + $0x1c] sm:$0xff] }
  0x66   : > { %3495 = vmatmul.msk.bf16.gmra.mxu1 %vm254_vm1, %v489_v17  ;;  %v804_v17 = vpack.c.bf16 %v769_v8, %v768_v7  ;;  %v1764_v22 = vpack.c.bf16 %v1729_v15, %v1728_v14  ;;  %v1414_v14 = vld [vmem:[%s3765_s30 + $0x43] sm:$0xff]  ;;  %v1415_v15 = vld [vmem:[%s3765_s30 + $0x4b] sm:$0xff] }
  0x74   : > { %3486 = vmatmul.msk.bf16.gmra.mxu2 %vm254_vm1, %v250_v26 }
  0x75   : > { %3505 = vmatmul.msk.bf16.gmra.mxu3 %vm254_vm1, %v499_v27  ;;  %3477 = vmatmul.msk.bf16.gmra.mxu0 %vm254_vm1, %v241_v28 }
  0x76   : > { %3496 = vmatmul.msk.bf16.gmra.mxu1 %vm254_vm1, %v490_v29 }
  0x84   : > { %3487 = vmatmul.msk.bf16.gmra.mxu2 %vm254_vm1, %v251_v38 }
  0x85   : > { %3506 = vmatmul.msk.bf16.gmra.mxu3 %vm254_vm1, %v500_v39  ;;  %3478 = vmatmul.msk.bf16.gmra.mxu0 %vm254_vm1, %v242_v40  ;;  %v1125_v40 = vpack.c.bf16 %v1091_v32, %v1090_v31 }
  0x86   : > { %3497 = vmatmul.msk.bf16.gmra.mxu1 %vm254_vm1, %v491_v41  ;;  %v1445_v41 = vpack.c.bf16 %v1411_v34, %v1410_v33 }
  0x92   : > { %v322_v61 = vpop.f32.mrf.mxu0 }
  0x93   : > { %v570_v63 = vpop.f32.mrf.mxu1 }
  0x94   : > { %v3887_v0 = vadd.f32 %v570_v63, %v322_v61  ;;  %3488 = vmatmul.msk.bf16.gmra.mxu2 %vm254_vm1, %v252_v58  ;;  %v1733_v58 = vld [vmem:[%s3765_s30 + $0x3c] sm:$0xff]  ;;  %v1126_v61 = vpack.c.bf16 %v1093_v53, %v1092_v52 }
  0x95   : > { %3507 = vmatmul.msk.bf16.gmra.mxu3 %vm254_vm1, %v501_v59  ;;  %3479 = vmatmul.msk.bf16.gmra.mxu0 %vm254_vm1, %v243_v60 }
  0x96   : > { %3498 = vmatmul.msk.bf16.gmra.mxu1 %vm254_vm1, %v492_v62  ;;  %v1446_v62 = vpack.c.bf16 %v1413_v55, %v1412_v54 }
  0x97   : > { %v367_v1 = vpop.f32.mrf.mxu2 }
  0x98   : > { %v615_v2 = vpop.f32.mrf.mxu3 }
  0x99   : > { %v3893_v3 = vadd.f32 %v615_v2, %v367_v1  ;;  %v3946_v1 = vpack.c.bf16 %v1733_v58, %v1732_v57 }
  0x9a   : > { %v324_v4 = vpop.f32.mrf.mxu0 }
  0x9b   : > { %v572_v5 = vpop.f32.mrf.mxu1 }
  0x9c   : > { %v3895_v6 = vadd.f32 %v572_v5, %v324_v4 }
  0x9f   : > { %v369_v13 = vpop.f32.mrf.mxu2 }
  0xa0   : > { %v617_v16 = vpop.f32.mrf.mxu3 }
  0xa1   : > { %v3905_v18 = vadd.f32 %v617_v16, %v369_v13  ;;  %v1095_v13 = vld [vmem:[%s3765_s30 + $0x4a] sm:$0xff] }
  0xa2   : > { %v327_v21 = vpop.f32.mrf.mxu0 }
  0xa3   : > { %v575_v23 = vpop.f32.mrf.mxu1 }
  0xa4   : > { %v3907_v24 = vadd.f32 %v575_v23, %v327_v21  ;;  %3509 = vmatmul.msk.bf16.vlgmr.msrb.gmra.mxu2 %vm254_vm1, %v804_v17  ;;  %v1734_v17 = vld [vmem:[%s3765_s30 + $0x44] sm:$0xff]  ;;  %v1447_v23 = vpack.c.bf16 %v1415_v15, %v1414_v14 }
  0xa5   : > { %3528 = vmatmul.msk.bf16.vlgmr.msrb.gmra.mxu3 %vm254_vm1, %v1124_v19  ;;  %3547 = vmatmul.msk.bf16.vlgmr.msrb.gmra.mxu0 %vm254_vm1, %v1444_v20 }
  0xa6   : > { %3566 = vmatmul.msk.bf16.vlgmr.msrb.gmra.mxu1 %vm254_vm1, %v1764_v22  ;;  %v1127_v22 = vpack.c.bf16 %v1095_v13, %v1094_v12  ;;  %v1738_v12 = vld [vmem:[%s3765_s30 + $0x64] sm:$0xff]  ;;  %v1739_v13 = vld [vmem:[%s3765_s30 + $0x6c] sm:$0xff] }
  0xa7   : > { %v372_v25 = vpop.f32.mrf.mxu2 }
  0xa8   : > { %v620_v26 = vpop.f32.mrf.mxu3 }
  0xa9   : > { %v3913_v27 = vadd.f32 %v620_v26, %v372_v25 }
  0xaa   : > { %v329_v28 = vpop.f32.mrf.mxu0 }
  0xab   : > { %v577_v29 = vpop.f32.mrf.mxu1 }
  0xac   : > { %v3915_v30 = vadd.f32 %v577_v29, %v329_v28 }
  0xaf   : > { %v374_v35 = vpop.f32.mrf.mxu2 }
  0xb0   : > { %v622_v38 = vpop.f32.mrf.mxu3 }
  0xb1   : > { %v3923_v39 = vadd.f32 %v622_v38, %v374_v35  ;;  %v1097_v38 = vld [vmem:[%s3765_s30 + $0x5a] sm:$0xff] }
  0xb2   : > { %v332_v42 = vpop.f32.mrf.mxu0 }
  0xb3   : > { %v580_v44 = vpop.f32.mrf.mxu1 }
  0xb4   : > { %v3927_v45 = vadd.f32 %v580_v44, %v332_v42  ;;  %3510 = vmatmul.msk.bf16.gmra.mxu2 %vm254_vm1, %v1124_v19  ;;  %v1735_v19 = vld [vmem:[%s3765_s30 + $0x4c] sm:$0xff]  ;;  %v1736_v44 = vld [vmem:[%s3765_s30 + $0x54] sm:$0xff] }
  0xb5   : > { %3529 = vmatmul.msk.bf16.gmra.mxu3 %vm254_vm1, %v1125_v40  ;;  %3548 = vmatmul.msk.bf16.gmra.mxu0 %vm254_vm1, %v1445_v41  ;;  %v3967_v26 = vpack.c.bf16 %v1735_v19, %v1734_v17  ;;  %v1417_v41 = vld [vmem:[%s3765_s30 + $0x5b] sm:$0xff] }
  0xb6   : > { %3567 = vmatmul.msk.bf16.gmra.mxu1 %vm254_vm1, %v3925_v43 }
  0xb7   : > { %v377_v46 = vpop.f32.mrf.mxu2 }
  0xb8   : > { %v625_v47 = vpop.f32.mrf.mxu3 }
  0xb9   : > { %v3934_v48 = vadd.f32 %v625_v47, %v377_v46  ;;  %v1737_v46 = vld [vmem:[%s3765_s30 + $0x5c] sm:$0xff] }
  0xba   : > { %v334_v49 = vpop.f32.mrf.mxu0  ;;  %v1768_v54 = vpack.c.bf16 %v1737_v46, %v1736_v44  ;;  %v1740_v44 = vld [vmem:[%s3765_s30 + $0x74] sm:$0xff]  ;;  %v1741_v46 = vld [vmem:[%s3765_s30 + $0x7c] sm:$0xff] }
  0xbb   : > { %v582_v50 = vpop.f32.mrf.mxu1 }
  0xbc   : > { %v3936_v51 = vadd.f32 %v582_v50, %v334_v49  ;;  %v1128_v50 = vpack.c.bf16 %v1097_v38, %v1096_v37  ;;  %v1100_v37 = vld [vmem:[%s3765_s30 + $0x72] sm:$0xff]  ;;  %v1101_v38 = vld [vmem:[%s3765_s30 + $0x7a] sm:$0xff] }
  0xbf   : > { %v379_v56 = vpop.f32.mrf.mxu2 }
  0xc0   : > { %v627_v59 = vpop.f32.mrf.mxu3 }
  0xc1   : > { %v3944_v60 = vadd.f32 %v627_v59, %v379_v56 }
  0xc2   : > { %v337_v63 = vpop.f32.mrf.mxu0 }
  0xc3   : > { %v585_v2 = vpop.f32.mrf.mxu1 }
  0xc4   : > { %v3948_v4 = vadd.f32 %v585_v2, %v337_v63  ;;  %3511 = vmatmul.msk.bf16.gmra.mxu2 %vm254_vm1, %v1125_v40  ;;  %v1416_v40 = vld [vmem:[%s3765_s30 + $0x53] sm:$0xff]  ;;  %v1098_v2 = vld [vmem:[%s3765_s30 + $0x62] sm:$0xff] }
  0xc5   : > { %3530 = vmatmul.msk.bf16.gmra.mxu3 %vm254_vm1, %v1126_v61  ;;  %3549 = vmatmul.msk.bf16.gmra.mxu0 %vm254_vm1, %v1446_v62  ;;  %v1448_v52 = vpack.c.bf16 %v1417_v41, %v1416_v40  ;;  %v1420_v40 = vld [vmem:[%s3765_s30 + $0x73] sm:$0xff]  ;;  %v1421_v41 = vld [vmem:[%s3765_s30 + $0x7b] sm:$0xff] }
  0xc6   : > { %3568 = vmatmul.msk.bf16.gmra.mxu1 %vm254_vm1, %v3946_v1 }
  0xc7   : > { %v382_v5 = vpop.f32.mrf.mxu2 }
  0xc8   : > { %v630_v7 = vpop.f32.mrf.mxu3 }
  0xc9   : > { %v3955_v8 = vadd.f32 %v630_v7, %v382_v5  ;;  %v1099_v5 = vld [vmem:[%s3765_s30 + $0x6a] sm:$0xff] }
  0xca   : > { %v339_v9 = vpop.f32.mrf.mxu0  ;;  %v1418_v7 = vld [vmem:[%s3765_s30 + $0x63] sm:$0xff] }
  0xcb   : > { %v587_v10 = vpop.f32.mrf.mxu1 }
  0xcc   : > { %v3957_v11 = vadd.f32 %v587_v10, %v339_v9  ;;  %v1419_v9 = vld [vmem:[%s3765_s30 + $0x6b] sm:$0xff] }
  0xcd   : > { %v1449_v17 = vpack.c.bf16 %v1419_v9, %v1418_v7 }
  0xcf   : > { %v384_v16 = vpop.f32.mrf.mxu2 }
  0xd0   : > { %v632_v20 = vpop.f32.mrf.mxu3 }
  0xd1   : > { %v3965_v21 = vadd.f32 %v632_v20, %v384_v16  ;;  %v1129_v16 = vpack.c.bf16 %v1099_v5, %v1098_v2  ;;  %v1769_v20 = vpack.c.bf16 %v1739_v13, %v1738_v12  ;;  %v1103_v12 = vld [vmem:[%s3765_s30 + $0x8a] sm:$0xff] }
  0xd2   : > { %v342_v25 = vpop.f32.mrf.mxu0  ;;  %v1422_v13 = vld [vmem:[%s3765_s30 + $0x83] sm:$0xff] }
  0xd3   : > { %v590_v28 = vpop.f32.mrf.mxu1 }
  0xd4   : > { %v3969_v29 = vadd.f32 %v590_v28, %v342_v25  ;;  %3512 = vmatmul.msk.bf16.gmra.mxu2 %vm254_vm1, %v1126_v61 }
  0xd5   : > { %3531 = vmatmul.msk.bf16.gmra.mxu3 %vm254_vm1, %v1127_v22  ;;  %3550 = vmatmul.msk.bf16.gmra.mxu0 %vm254_vm1, %v1447_v23 }
  0xd6   : > { %3569 = vmatmul.msk.bf16.gmra.mxu1 %vm254_vm1, %v3967_v26 }
  0xd7   : > { %v387_v31 = vpop.f32.mrf.mxu2 }
  0xd8   : > { %v635_v32 = vpop.f32.mrf.mxu3 }
  0xd9   : > { %v3976_v33 = vadd.f32 %v635_v32, %v387_v31 }
  0xda   : > { %v344_v34 = vpop.f32.mrf.mxu0 }
  0xdb   : > { %v592_v35 = vpop.f32.mrf.mxu1 }
  0xdc   : > { %v3978_v36 = vadd.f32 %v592_v35, %v344_v34 }
  0xdf   : > { %v389_v42 = vpop.f32.mrf.mxu2 }
  0xe0   : > { %v637_v47 = vpop.f32.mrf.mxu3 }
  0xe1   : > { %v3986_v49 = vadd.f32 %v637_v47, %v389_v42 }
  0xe2   : > { %v347_v53 = vpop.f32.mrf.mxu0 }
  0xe3   : > { %v595_v55 = vpop.f32.mrf.mxu1 }
  0xe4   : > { %v3988_v56 = vadd.f32 %v595_v55, %v347_v53  ;;  %3513 = vmatmul.msk.bf16.gmra.mxu2 %vm254_vm1, %v1127_v22  ;;  %v1450_v53 = vpack.c.bf16 %v1421_v41, %v1420_v40  ;;  %v1770_v55 = vpack.c.bf16 %v1741_v46, %v1740_v44 }
  0xe5   : > { %3532 = vmatmul.msk.bf16.gmra.mxu3 %vm254_vm1, %v1128_v50  ;;  %3551 = vmatmul.msk.bf16.gmra.mxu0 %vm254_vm1, %v1448_v52  ;;  %v1130_v52 = vpack.c.bf16 %v1101_v38, %v1100_v37 }
  0xe6   : > { %3570 = vmatmul.msk.bf16.gmra.mxu1 %vm254_vm1, %v1768_v54 }
  0xe7   : > { %v392_v57 = vpop.f32.mrf.mxu2 }
  0xe8   : > { %v640_v58 = vpop.f32.mrf.mxu3 }
  0xe9   : > { %v3994_v59 = vadd.f32 %v640_v58, %v392_v57 }
  0xea   : > { %v349_v61 = vpop.f32.mrf.mxu0 }
  0xeb   : > { %v597_v62 = vpop.f32.mrf.mxu1 }
  0xec   : > { %v3996_v63 = vadd.f32 %v597_v62, %v349_v61 }
  0xef   : > { %v394_v10 = vpop.f32.mrf.mxu2 }
  0xf0   : > { %v642_v14 = vpop.f32.mrf.mxu3 }
  0xf1   : > { %v4004_v15 = vadd.f32 %v642_v14, %v394_v10  ;;  %v1102_v10 = vld [vmem:[%s3765_s30 + $0x82] sm:$0xff]  ;;  %v1423_v14 = vld [vmem:[%s3765_s30 + $0x8b] sm:$0xff] }
  0xf2   : > { %v352_v19 = vpop.f32.mrf.mxu0 }
  0xf3   : > { %v600_v22 = vpop.f32.mrf.mxu1 }
  0xf4   : > { %v4006_v23 = vadd.f32 %v600_v22, %v352_v19  ;;  %3514 = vmatmul.msk.bf16.gmra.mxu2 %vm254_vm1, %v1128_v50  ;;  %v1743_v19 = vld [vmem:[%s3765_s30 + $0x8c] sm:$0xff] }
  0xf5   : > { %3533 = vmatmul.msk.bf16.gmra.mxu3 %vm254_vm1, %v1129_v16  ;;  %3552 = vmatmul.msk.bf16.gmra.mxu0 %vm254_vm1, %v1449_v17  ;;  %v1742_v17 = vld [vmem:[%s3765_s30 + $0x84] sm:$0xff] }
  0xf6   : > { %3571 = vmatmul.msk.bf16.gmra.mxu1 %vm254_vm1, %v1769_v20 }
  0xf7   : > { %v397_v25 = vpop.f32.mrf.mxu2 }
  0xf8   : > { %v645_v28 = vpop.f32.mrf.mxu3 }
  0xf9   : > { %v4012_v31 = vadd.f32 %v645_v28, %v397_v25  ;;  %v1131_v25 = vpack.c.bf16 %v1103_v12, %v1102_v10  ;;  %v1451_v28 = vpack.c.bf16 %v1423_v14, %v1422_v13 }
  0xfa   : > { %v354_v32 = vpop.f32.mrf.mxu0 }
  0xfb   : > { %v602_v34 = vpop.f32.mrf.mxu1 }
  0xfc   : > { %v4014_v35 = vadd.f32 %v602_v34, %v354_v32  ;;  %v1771_v34 = vpack.c.bf16 %v1743_v19, %v1742_v17 }
  0xff   : > { %v399_v42 = vpop.f32.mrf.mxu2 }
 0x100   : > { %v647_v47 = vpop.f32.mrf.mxu3 }
 0x101   : > { %v4022_v50 = vadd.f32 %v647_v47, %v399_v42 }
 0x102   : > { %v357_v54 = vpop.f32.mrf.mxu0 }
 0x103   : > { %v605_v57 = vpop.f32.mrf.mxu1 }
 0x104   : > { %v4024_v58 = vadd.f32 %v605_v57, %v357_v54  ;;  %3515 = vmatmul.msk.bf16.gmra.mxu2 %vm254_vm1, %v1129_v16  ;;  %v1105_v54 = vld [vmem:[%s3765_s30 + $0x9a] sm:$0xff] }
 0x105   : > { %3534 = vmatmul.msk.bf16.gmra.mxu3 %vm254_vm1, %v1130_v52  ;;  %3553 = vmatmul.msk.bf16.gmra.mxu0 %vm254_vm1, %v1450_v53  ;;  %v1104_v53 = vld [vmem:[%s3765_s30 + $0x92] sm:$0xff] }
 0x106   : > { %3572 = vmatmul.msk.bf16.gmra.mxu1 %vm254_vm1, %v1770_v55  ;;  %v1424_v55 = vld [vmem:[%s3765_s30 + $0x93] sm:$0xff]  ;;  %v1132_v12 = vpack.c.bf16 %v1105_v54, %v1104_v53  ;;  %v1427_v53 = vld [vmem:[%s3765_s30 + $0xab] sm:$0xff] }
 0x107   : > { %v402_v61 = vpop.f32.mrf.mxu2  ;;  %v3682_v57 = vld [vmem:[%s4645_s2 + $0x38] sm:$0xff] }
 0x108   : > { %v650_v62 = vpop.f32.mrf.mxu3  ;;  %3274 = vmatpush.bf16.msra.mxu1 %v3682_v57 }
 0x109   : > { %v4030_v2 = vadd.f32 %v650_v62, %v402_v61  ;;  %v1744_v62 = vld [vmem:[%s3765_s30 + $0x94] sm:$0xff] }
 0x10a   : > { %v359_v5 = vpop.f32.mrf.mxu0 }
 0x10b   : > { %v607_v7 = vpop.f32.mrf.mxu1 }
 0x10c   : > { %v4032_v9 = vadd.f32 %v607_v7, %v359_v5  ;;  %v1745_v5 = vld [vmem:[%s3765_s30 + $0x9c] sm:$0xff] }
 0x10f   : > { %v404_v16 = vpop.f32.mrf.mxu2 }
 0x110   : > { %v652_v20 = vpop.f32.mrf.mxu3 }
 0x111   : > { %v4040_v22 = vadd.f32 %v652_v20, %v404_v16  ;;  %v1772_v16 = vpack.c.bf16 %v1745_v5, %v1744_v62 }
 0x112   : > { %v362_v32 = vpop.f32.mrf.mxu0 }
 0x113   : > { %v610_v37 = vpop.f32.mrf.mxu1 }
 0x114   : > { %v4042_v38 = vadd.f32 %v610_v37, %v362_v32  ;;  %3516 = vmatmul.msk.bf16.gmra.mxu2 %vm254_vm1, %v1130_v52  ;;  %v1425_v52 = vld [vmem:[%s3765_s30 + $0x9b] sm:$0xff] }
 0x115   : > { %3535 = vmatmul.msk.bf16.gmra.mxu3 %vm254_vm1, %v1131_v25  ;;  %3554 = vmatmul.msk.bf16.gmra.mxu0 %vm254_vm1, %v1451_v28  ;;  %v1452_v13 = vpack.c.bf16 %v1425_v52, %v1424_v55  ;;  %v1746_v55 = vld [vmem:[%s3765_s30 + $0xa4] sm:$0xff]  ;;  %v1747_v52 = vld [vmem:[%s3765_s30 + $0xac] sm:$0xff] }
 0x116   : > { %3573 = vmatmul.msk.bf16.gmra.mxu1 %vm254_vm1, %v1771_v34 }
 0x117   : > { %v407_v40 = vpop.f32.mrf.mxu2 }
 0x118   : > { %v655_v41 = vpop.f32.mrf.mxu3 }
 0x119   : > { %v4048_v42 = vadd.f32 %v655_v41, %v407_v40  ;;  %v1106_v41 = vld [vmem:[%s3765_s30 + $0xa2] sm:$0xff] }
 0x11a   : > { %v364_v44 = vpop.f32.mrf.mxu0 }
 0x11b   : > { %v612_v46 = vpop.f32.mrf.mxu1 }
 0x11c   : > { %v4050_v47 = vadd.f32 %v612_v46, %v364_v44  ;;  %v1426_v46 = vld [vmem:[%s3765_s30 + $0xa3] sm:$0xff] }
 0x11d   : > { %v1453_v5 = vpack.c.bf16 %v1427_v53, %v1426_v46  ;;  %v1428_v46 = vld [vmem:[%s3765_s30 + $0xb3] sm:$0xff]  ;;  %v1429_v53 = vld [vmem:[%s3765_s30 + $0xbb] sm:$0xff] }
 0x11f   : > { %v409_v61 = vpop.f32.mrf.mxu2 }
 0x120   : > { %v657_v7 = vpop.f32.mrf.mxu3 }
 0x121   : > { %v4061_v10 = vadd.f32 %v657_v7, %v409_v61 }
 0x122   : > { %v1530_v14 = vpop.f32.mrf.mxu0 }
 0x123   : > { %v1850_v17 = vpop.f32.mrf.mxu1 }
 0x124   : > { %3517 = vmatmul.msk.bf16.gmra.mxu2 %vm254_vm1, %v1131_v25  ;;  %v1107_v25 = vld [vmem:[%s3765_s30 + $0xaa] sm:$0xff] }
 0x125   : > { %3536 = vmatmul.msk.bf16.gmra.mxu3 %vm254_vm1, %v1132_v12  ;;  %3555 = vmatmul.msk.bf16.gmra.mxu0 %vm254_vm1, %v1452_v13  ;;  %v1133_v62 = vpack.c.bf16 %v1107_v25, %v1106_v41  ;;  %v1773_v13 = vpack.c.bf16 %v1747_v52, %v1746_v55  ;;  %v1109_v25 = vld [vmem:[%s3765_s30 + $0xba] sm:$0xff] }
 0x126   : > { %3574 = vmatmul.msk.bf16.gmra.mxu1 %vm254_vm1, %v1772_v16  ;;  %v1749_v55 = vld [vmem:[%s3765_s30 + $0xbc] sm:$0xff] }
 0x127   : > { %v890_v19 = vpop.f32.mrf.mxu2 }
 0x128   : > { %v1016_v20 = vadd.f32 %v890_v19, %v3887_v0  ;;  %v1210_v28 = vpop.f32.mrf.mxu3 }
 0x12a   : > { %v1336_v32 = vadd.f32 %v1210_v28, %v1016_v20  ;;  %v1532_v34 = vpop.f32.mrf.mxu0 }
 0x12b   : > { %v1852_v37 = vpop.f32.mrf.mxu1 }
 0x12c   : > { %v1656_v40 = vadd.f32 %v1530_v14, %v1336_v32 }
 0x12e   : > { %v4069_v44 = vadd.f32 %v1850_v17, %v1656_v40 }
 0x12f   : > { %v892_v54 = vpop.f32.mrf.mxu2 }
 0x130   : > { %v1017_v57 = vadd.f32 %v892_v54, %v3895_v6  ;;  %v1212_v61 = vpop.f32.mrf.mxu3 }
 0x132   : > { %v1337_v0 = vadd.f32 %v1212_v61, %v1017_v57  ;;  %v1535_v7 = vpop.f32.mrf.mxu0 }
 0x133   : > { %v1855_v16 = vpop.f32.mrf.mxu1 }
 0x134   : > { %3518 = vmatmul.msk.bf16.gmra.mxu2 %vm254_vm1, %v1132_v12  ;;  %v1657_v14 = vadd.f32 %v1532_v34, %v1337_v0  ;;  %v1108_v34 = vld [vmem:[%s3765_s30 + $0xb2] sm:$0xff] }
 0x135   : > { %3537 = vmatmul.msk.bf16.gmra.mxu3 %vm254_vm1, %v1133_v62  ;;  %3556 = vmatmul.msk.bf16.gmra.mxu0 %vm254_vm1, %v1453_v5  ;;  %v1134_v61 = vpack.c.bf16 %v1109_v25, %v1108_v34  ;;  %v1454_v5 = vpack.c.bf16 %v1429_v53, %v1428_v46  ;;  %v1110_v34 = vld [vmem:[%s3765_s30 + $0xc2] sm:$0xff]  ;;  %v1111_v46 = vld [vmem:[%s3765_s30 + $0xca] sm:$0xff] }
 0x136   : > { %v4080_v6 = vadd.f32 %v1852_v37, %v1657_v14  ;;  %3575 = vmatmul.msk.bf16.gmra.mxu1 %vm254_vm1, %v1773_v13  ;;  %v1748_v37 = vld [vmem:[%s3765_s30 + $0xb4] sm:$0xff]  ;;  %v1430_v53 = vld [vmem:[%s3765_s30 + $0xc3] sm:$0xff] }
 0x137   : > { %v895_v17 = vpop.f32.mrf.mxu2  ;;  %v1774_v13 = vpack.c.bf16 %v1749_v55, %v1748_v37  ;;  %v1751_v55 = vld [vmem:[%s3765_s30 + $0xcc] sm:$0xff] }
 0x138   : > { %v1018_v19 = vadd.f32 %v895_v17, %v3907_v24  ;;  %v1215_v20 = vpop.f32.mrf.mxu3 }
 0x13a   : > { %v1338_v28 = vadd.f32 %v1215_v20, %v1018_v19  ;;  %v1537_v32 = vpop.f32.mrf.mxu0 }
 0x13b   : > { %v1857_v12 = vpop.f32.mrf.mxu1 }
 0x13c   : > { %v1658_v40 = vadd.f32 %v1535_v7, %v1338_v28  ;;  %v3681_v7 = vld [vmem:[%s4645_s2 + $0x30] sm:$0xff] }
 0x13d   : > { %3275 = vmatpush.bf16.msra.mxu1 %v3681_v7 }
 0x13e   : > { %v4085_v41 = vadd.f32 %v1855_v16, %v1658_v40 }
 0x13f   : > { %v897_v54 = vpop.f32.mrf.mxu2 }
 0x140   : > { %v1019_v52 = vadd.f32 %v897_v54, %v3915_v30  ;;  %v1217_v57 = vpop.f32.mrf.mxu3  ;;  %v1431_v54 = vld [vmem:[%s3765_s30 + $0xcb] sm:$0xff] }
 0x142   : > { %v1339_v24 = vadd.f32 %v1217_v57, %v1019_v52  ;;  %v1540_v0 = vpop.f32.mrf.mxu0 }
 0x143   : > { %v1860_v16 = vpop.f32.mrf.mxu1 }
 0x144   : > { %3519 = vmatmul.msk.bf16.gmra.mxu2 %vm254_vm1, %v1133_v62  ;;  %v1659_v14 = vadd.f32 %v1537_v32, %v1339_v24  ;;  %v1455_v24 = vpack.c.bf16 %v1431_v54, %v1430_v53  ;;  %v1432_v53 = vld [vmem:[%s3765_s30 + $0xd3] sm:$0xff]  ;;  %v1433_v54 = vld [vmem:[%s3765_s30 + $0xdb] sm:$0xff] }
 0x145   : > { %3538 = vmatmul.msk.bf16.gmra.mxu3 %vm254_vm1, %v1134_v61  ;;  %3557 = vmatmul.msk.bf16.gmra.mxu0 %vm254_vm1, %v1454_v5  ;;  %v1135_v5 = vpack.c.bf16 %v1111_v46, %v1110_v34  ;;  %v1113_v46 = vld [vmem:[%s3765_s30 + $0xda] sm:$0xff] }
 0x146   : > { %v4099_v30 = vadd.f32 %v1857_v12, %v1659_v14  ;;  %3576 = vmatmul.msk.bf16.gmra.mxu1 %vm254_vm1, %v1774_v13  ;;  %v1750_v12 = vld [vmem:[%s3765_s30 + $0xc4] sm:$0xff] }
 0x147   : > { %v900_v17 = vpop.f32.mrf.mxu2  ;;  %v1775_v7 = vpack.c.bf16 %v1751_v55, %v1750_v12  ;;  %v1753_v12 = vld [vmem:[%s3765_s30 + $0xdc] sm:$0xff] }
 0x148   : > { %v1020_v19 = vadd.f32 %v900_v17, %v3927_v45  ;;  %v1220_v20 = vpop.f32.mrf.mxu3 }
 0x14a   : > { %v1340_v62 = vadd.f32 %v1220_v20, %v1020_v19  ;;  %v1542_v28 = vpop.f32.mrf.mxu0 }
 0x14b   : > { %v1862_v32 = vpop.f32.mrf.mxu1 }
 0x14c   : > { %v1660_v40 = vadd.f32 %v1540_v0, %v1340_v62 }
 0x14e   : > { %v4104_v25 = vadd.f32 %v1860_v16, %v1660_v40 }
 0x14f   : > { %v902_v37 = vpop.f32.mrf.mxu2 }
 0x150   : > { %v1021_v52 = vadd.f32 %v902_v37, %v3936_v51  ;;  %v1222_v57 = vpop.f32.mrf.mxu3 }
 0x152   : > { %v1341_v45 = vadd.f32 %v1222_v57, %v1021_v52  ;;  %v1545_v13 = vpop.f32.mrf.mxu0 }
 0x153   : > { %v1865_v14 = vpop.f32.mrf.mxu1 }
 0x154   : > { %3520 = vmatmul.msk.bf16.gmra.mxu2 %vm254_vm1, %v1134_v61  ;;  %v1661_v0 = vadd.f32 %v1542_v28, %v1341_v45  ;;  %v1112_v28 = vld [vmem:[%s3765_s30 + $0xd2] sm:$0xff] }
 0x155   : > { %3539 = vmatmul.msk.bf16.gmra.mxu3 %vm254_vm1, %v1135_v5  ;;  %3558 = vmatmul.msk.bf16.gmra.mxu0 %vm254_vm1, %v1455_v24  ;;  %v1136_v57 = vpack.c.bf16 %v1113_v46, %v1112_v28  ;;  %v1456_v24 = vpack.c.bf16 %v1433_v54, %v1432_v53  ;;  %v1114_v28 = vld [vmem:[%s3765_s30 + $0xe2] sm:$0xff]  ;;  %v1115_v46 = vld [vmem:[%s3765_s30 + $0xea] sm:$0xff] }
 0x156   : > { %v4115_v51 = vadd.f32 %v1862_v32, %v1661_v0  ;;  %3577 = vmatmul.msk.bf16.gmra.mxu1 %vm254_vm1, %v1775_v7  ;;  %v1752_v32 = vld [vmem:[%s3765_s30 + $0xd4] sm:$0xff]  ;;  %v1434_v53 = vld [vmem:[%s3765_s30 + $0xe3] sm:$0xff]  ;;  %v1435_v54 = vld [vmem:[%s3765_s30 + $0xeb] sm:$0xff] }
 0x157   : > { %v905_v16 = vpop.f32.mrf.mxu2  ;;  %v1776_v7 = vpack.c.bf16 %v1753_v12, %v1752_v32  ;;  %v1754_v32 = vld [vmem:[%s3765_s30 + $0xe4] sm:$0xff]  ;;  %v1755_v12 = vld [vmem:[%s3765_s30 + $0xec] sm:$0xff] }
 0x158   : > { %v1022_v17 = vadd.f32 %v905_v16, %v3948_v4  ;;  %v1225_v19 = vpop.f32.mrf.mxu3 }
 0x15a   : > { %v1342_v20 = vadd.f32 %v1225_v19, %v1022_v17  ;;  %v1547_v62 = vpop.f32.mrf.mxu0 }
 0x15b   : > { %v1867_v61 = vpop.f32.mrf.mxu1 }
 0x15c   : > { %v1662_v40 = vadd.f32 %v1545_v13, %v1342_v20 }
 0x15e   : > { %v4120_v34 = vadd.f32 %v1865_v14, %v1662_v40 }
 0x15f   : > { %v907_v37 = vpop.f32.mrf.mxu2 }
 0x160   : > { %v1023_v55 = vadd.f32 %v907_v37, %v3957_v11  ;;  %v1227_v52 = vpop.f32.mrf.mxu3  ;;  %v3680_v11 = vld [vmem:[%s4645_s2 + $0x28] sm:$0xff] }
 0x161   : > { %3276 = vmatpush.bf16.msra.mxu1 %v3680_v11 }
 0x162   : > { %v1343_v4 = vadd.f32 %v1227_v52, %v1023_v55  ;;  %v1550_v45 = vpop.f32.mrf.mxu0 }
 0x163   : > { %v1870_v0 = vpop.f32.mrf.mxu1 }
 0x164   : > { %3521 = vmatmul.msk.bf16.gmra.mxu2 %vm254_vm1, %v1135_v5  ;;  %v1663_v13 = vadd.f32 %v1547_v62, %v1343_v4 }
 0x165   : > { %3540 = vmatmul.msk.bf16.gmra.mxu3 %vm254_vm1, %v1136_v57  ;;  %3559 = vmatmul.msk.bf16.gmra.mxu0 %vm254_vm1, %v1456_v24  ;;  %v1137_v24 = vpack.c.bf16 %v1115_v46, %v1114_v28  ;;  %v1117_v46 = vld [vmem:[%s3765_s30 + $0xfa] sm:$0xff] }
 0x166   : > { %v4131_v14 = vadd.f32 %v1867_v61, %v1663_v13  ;;  %3578 = vmatmul.msk.bf16.gmra.mxu1 %vm254_vm1, %v1776_v7  ;;  %v1777_v13 = vpack.c.bf16 %v1755_v12, %v1754_v32  ;;  %v1757_v32 = vld [vmem:[%s3765_s30 + $0xfc] sm:$0xff] }
 0x167   : > { %v910_v16 = vpop.f32.mrf.mxu2 }
 0x168   : > { %v1024_v5 = vadd.f32 %v910_v16, %v3969_v29  ;;  %v1230_v17 = vpop.f32.mrf.mxu3  ;;  %v1457_v29 = vpack.c.bf16 %v1435_v54, %v1434_v53  ;;  %v1436_v53 = vld [vmem:[%s3765_s30 + $0xf3] sm:$0xff]  ;;  %v1437_v54 = vld [vmem:[%s3765_s30 + $0xfb] sm:$0xff] }
 0x16a   : > { %v1344_v19 = vadd.f32 %v1230_v17, %v1024_v5  ;;  %v1552_v20 = vpop.f32.mrf.mxu0 }
 0x16b   : > { %v1872_v62 = vpop.f32.mrf.mxu1 }
 0x16c   : > { %v1664_v40 = vadd.f32 %v1550_v45, %v1344_v19 }
 0x16e   : > { %v4139_v61 = vadd.f32 %v1870_v0, %v1664_v40 }
 0x16f   : > { %v912_v37 = vpop.f32.mrf.mxu2 }
 0x170   : > { %v1025_v55 = vadd.f32 %v912_v37, %v3978_v36  ;;  %v1232_v52 = vpop.f32.mrf.mxu3 }
 0x172   : > { %v1345_v4 = vadd.f32 %v1232_v52, %v1025_v55  ;;  %v1555_v7 = vpop.f32.mrf.mxu0 }
 0x173   : > { %v1875_v11 = vpop.f32.mrf.mxu1 }
 0x174   : > { %3522 = vmatmul.msk.bf16.gmra.mxu2 %vm254_vm1, %v1136_v57  ;;  %v1665_v45 = vadd.f32 %v1552_v20, %v1345_v4  ;;  %v1116_v20 = vld [vmem:[%s3765_s30 + $0xf2] sm:$0xff] }
 0x175   : > { %3541 = vmatmul.msk.bf16.gmra.mxu3 %vm254_vm1, %v1137_v24  ;;  %3560 = vmatmul.msk.bf16.gmra.mxu0 %vm254_vm1, %v1457_v29  ;;  %v1138_v52 = vpack.c.bf16 %v1117_v46, %v1116_v20  ;;  %v1458_v29 = vpack.c.bf16 %v1437_v54, %v1436_v53  ;;  %v1119_v46 = vld [vmem:[%s3765_s30 + $0x10a] sm:$0xff] }
 0x176   : > { %v4150_v36 = vadd.f32 %v1872_v62, %v1665_v45  ;;  %3579 = vmatmul.msk.bf16.gmra.mxu1 %vm254_vm1, %v1777_v13  ;;  %v1756_v62 = vld [vmem:[%s3765_s30 + $0xf4] sm:$0xff]  ;;  %v1438_v53 = vld [vmem:[%s3765_s30 + $0x103] sm:$0xff]  ;;  %v1439_v54 = vld [vmem:[%s3765_s30 + $0x10b] sm:$0xff] }
 0x177   : > { %v915_v0 = vpop.f32.mrf.mxu2  ;;  %v1778_v13 = vpack.c.bf16 %v1757_v32, %v1756_v62  ;;  %v1758_v62 = vld [vmem:[%s3765_s30 + $0x104] sm:$0xff] }
 0x178   : > { %v1026_v16 = vadd.f32 %v915_v0, %v3988_v56  ;;  %v1235_v5 = vpop.f32.mrf.mxu3 }
 0x17a   : > { %v1346_v17 = vadd.f32 %v1235_v5, %v1026_v16  ;;  %v1557_v19 = vpop.f32.mrf.mxu0 }
 0x17b   : > { %v1877_v57 = vpop.f32.mrf.mxu1 }
 0x17c   : > { %v1666_v40 = vadd.f32 %v1555_v7, %v1346_v17  ;;  %v3679_v17 = vld [vmem:[%s4645_s2 + $0x20] sm:$0xff] }
 0x17d   : > { %3277 = vmatpush.bf16.msra.mxu1 %v3679_v17 }
 0x17e   : > { %v4155_v28 = vadd.f32 %v1875_v11, %v1666_v40 }
 0x17f   : > { %v917_v37 = vpop.f32.mrf.mxu2 }
 0x180   : > { %v1027_v12 = vadd.f32 %v917_v37, %v3996_v63  ;;  %v1237_v55 = vpop.f32.mrf.mxu3 }
 0x182   : > { %v1347_v56 = vadd.f32 %v1237_v55, %v1027_v12  ;;  %v1560_v4 = vpop.f32.mrf.mxu0 }
 0x183   : > { %v1880_v45 = vpop.f32.mrf.mxu1 }
 0x184   : > { %3523 = vmatmul.msk.bf16.gmra.mxu2 %vm254_vm1, %v1137_v24  ;;  %v1667_v7 = vadd.f32 %v1557_v19, %v1347_v56 }
 0x185   : > { %3542 = vmatmul.msk.bf16.gmra.mxu3 %vm254_vm1, %v1138_v52  ;;  %3561 = vmatmul.msk.bf16.gmra.mxu0 %vm254_vm1, %v1458_v29  ;;  %v1459_v29 = vpack.c.bf16 %v1439_v54, %v1438_v53  ;;  %v1441_v53 = vld [vmem:[%s3765_s30 + $0x11b] sm:$0xff] }
 0x186   : > { %v4166_v11 = vadd.f32 %v1877_v57, %v1667_v7  ;;  %3580 = vmatmul.msk.bf16.gmra.mxu1 %vm254_vm1, %v1778_v13  ;;  %v1118_v57 = vld [vmem:[%s3765_s30 + $0x102] sm:$0xff] }
 0x187   : > { %v920_v63 = vpop.f32.mrf.mxu2  ;;  %v1139_v55 = vpack.c.bf16 %v1119_v46, %v1118_v57  ;;  %v1121_v57 = vld [vmem:[%s3765_s30 + $0x11a] sm:$0xff] }
 0x188   : > { %v1028_v0 = vadd.f32 %v920_v63, %v4006_v23  ;;  %v1240_v16 = vpop.f32.mrf.mxu3  ;;  %v1759_v23 = vld [vmem:[%s3765_s30 + $0x10c] sm:$0xff] }
 0x189   : > { %v1779_v7 = vpack.c.bf16 %v1759_v23, %v1758_v62  ;;  %v1440_v46 = vld [vmem:[%s3765_s30 + $0x113] sm:$0xff]  ;;  %v1761_v62 = vld [vmem:[%s3765_s30 + $0x11c] sm:$0xff] }
 0x18a   : > { %v1348_v5 = vadd.f32 %v1240_v16, %v1028_v0  ;;  %v1562_v24 = vpop.f32.mrf.mxu0 }
 0x18b   : > { %v4173_v19 = vpop.f32.mrf.mxu1 }
 0x18c   : > { %v1668_v40 = vadd.f32 %v1560_v4, %v1348_v5 }
 0x18e   : > { %v4176_v20 = vadd.f32 %v1880_v45, %v1668_v40  ;;  %v1120_v40 = vld [vmem:[%s3765_s30 + $0x112] sm:$0xff] }
 0x18f   : > { %v922_v37 = vpop.f32.mrf.mxu2 }
 0x190   : > { %v1029_v32 = vadd.f32 %v922_v37, %v4014_v35  ;;  %v1242_v12 = vpop.f32.mrf.mxu3  ;;  %v1760_v37 = vld [vmem:[%s3765_s30 + $0x114] sm:$0xff] }
 0x192   : > { %v1349_v56 = vadd.f32 %v1242_v12, %v1029_v32  ;;  %v1565_v13 = vpop.f32.mrf.mxu0  ;;  %v1140_v12 = vpack.c.bf16 %v1121_v57, %v1120_v40  ;;  %v1122_v40 = vld [vmem:[%s3765_s30 + $0x122] sm:$0xff] }
 0x193   : > { %v1885_v4 = vpop.f32.mrf.mxu1 }
 0x194   : > { %3524 = vmatmul.msk.bf16.gmra.mxu2 %vm254_vm1, %v1138_v52  ;;  %v4185_v45 = vadd.f32 %v1562_v24, %v1349_v56 }
 0x195   : > { %3543 = vmatmul.msk.bf16.gmra.mxu3 %vm254_vm1, %v1139_v55  ;;  %3562 = vmatmul.msk.bf16.gmra.mxu0 %vm254_vm1, %v1459_v29 }
 0x196   : > { %3581 = vmatmul.msk.bf16.gmra.mxu1 %vm254_vm1, %v1779_v7  ;;  %v1780_v7 = vpack.c.bf16 %v1761_v62, %v1760_v37  ;;  %v1762_v62 = vld [vmem:[%s3765_s30 + $0x124] sm:$0xff] }
 0x197   : > { %v925_v35 = vpop.f32.mrf.mxu2 }
 0x198   : > { %v1030_v63 = vadd.f32 %v925_v35, %v4024_v58  ;;  %v1245_v0 = vpop.f32.mrf.mxu3  ;;  %v1460_v58 = vpack.c.bf16 %v1441_v53, %v1440_v46  ;;  %v1442_v46 = vld [vmem:[%s3765_s30 + $0x123] sm:$0xff]  ;;  %v1443_v53 = vld [vmem:[%s3765_s30 + $0x12b] sm:$0xff] }
 0x19a   : > { %v1350_v16 = vadd.f32 %v1245_v0, %v1030_v63  ;;  %v1567_v5 = vpop.f32.mrf.mxu0 }
 0x19b   : > { %v4191_v17 = vpop.f32.mrf.mxu1 }
 0x19c   : > { %v1670_v52 = vadd.f32 %v1565_v13, %v1350_v16 }
 0x19e   : > { %v4194_v24 = vadd.f32 %v1885_v4, %v1670_v52 }
 0x19f   : > { %v927_v54 = vpop.f32.mrf.mxu2 }
 0x1a0   : > { %v1031_v23 = vadd.f32 %v927_v54, %v4032_v9  ;;  %v1247_v32 = vpop.f32.mrf.mxu3  ;;  %v3678_v54 = vld [vmem:[%s4645_s2 + $0x18] sm:$0xff] }
 0x1a1   : > { %3278 = vmatpush.bf16.msra.mxu1 %v3678_v54  ;;  %v2688_v54 = vld [vmem:[%s3765_s30 + $0x26] sm:$0xff] }
 0x1a2   : > { %v1351_v29 = vadd.f32 %v1247_v32, %v1031_v23  ;;  %v1570_v56 = vpop.f32.mrf.mxu0  ;;  %v1763_v23 = vld [vmem:[%s3765_s30 + $0x12c] sm:$0xff] }
 0x1a3   : > { %v1890_v13 = vpop.f32.mrf.mxu1 }
 0x1a4   : > { %3525 = vmatmul.msk.bf16.gmra.mxu2 %vm254_vm1, %v1139_v55  ;;  %v4203_v4 = vadd.f32 %v1567_v5, %v1351_v29  ;;  %v1123_v5 = vld [vmem:[%s3765_s30 + $0x12a] sm:$0xff]  ;;  %v1461_v29 = vpack.c.bf16 %v1443_v53, %v1442_v46 }
 0x1a5   : > { %3544 = vmatmul.msk.bf16.gmra.mxu3 %vm254_vm1, %v1140_v12  ;;  %3563 = vmatmul.msk.bf16.gmra.mxu0 %vm254_vm1, %v1460_v58  ;;  %v1141_v58 = vpack.c.bf16 %v1123_v5, %v1122_v40  ;;  %v2368_v53 = vld [vmem:[%s3765_s30 + $0x25] sm:$0xff] }
 0x1a6   : > { %3582 = vmatmul.msk.bf16.gmra.mxu1 %vm254_vm1, %v1780_v7 }
 0x1a7   : > { %v930_v9 = vpop.f32.mrf.mxu2 }
 0x1a8   : > { %v1032_v35 = vadd.f32 %v930_v9, %v4042_v38  ;;  %v1250_v63 = vpop.f32.mrf.mxu3 }
 0x1aa   : > { %v1352_v0 = vadd.f32 %v1250_v63, %v1032_v35  ;;  %v1572_v16 = vpop.f32.mrf.mxu0 }
 0x1ab   : > { %v4209_v52 = vpop.f32.mrf.mxu1 }
 0x1ac   : > { %v1672_v55 = vadd.f32 %v1570_v56, %v1352_v0 }
 0x1ae   : > { %v4213_v57 = vadd.f32 %v1890_v13, %v1672_v55  ;;  %v1781_v13 = vpack.c.bf16 %v1763_v23, %v1762_v62 }
 0x1af   : > { %v932_v37 = vpop.f32.mrf.mxu2 }
 0x1b0   : > { %v1033_v38 = vadd.f32 %v932_v37, %v4050_v47  ;;  %v1252_v32 = vpop.f32.mrf.mxu3  ;;  %v2689_v37 = vld [vmem:[%s3765_s30 + $0x2e] sm:$0xff] }
 0x1b2   : > { %v1353_v56 = vadd.f32 %v1252_v32, %v1033_v38  ;;  %v1575_v7 = vpop.f32.mrf.mxu0 }
 0x1b3   : > { %v1895_v9 = vpop.f32.mrf.mxu1 }
 0x1b4   : > { %3526 = vmatmul.msk.bf16.gmra.mxu2 %vm254_vm1, %v1140_v12  ;;  %v4224_v35 = vadd.f32 %v1572_v16, %v1353_v56  ;;  %v2369_v16 = vld [vmem:[%s3765_s30 + $0x2d] sm:$0xff] }
 0x1b5   : > { %3545 = vmatmul.msk.bf16.gmra.mxu3 %vm254_vm1, %v1141_v58  ;;  %3564 = vmatmul.msk.bf16.gmra.mxu0 %vm254_vm1, %v1461_v29  ;;  %v2404_v32 = vpack.c.bf16 %v2369_v16, %v2368_v53  ;;  %v2724_v58 = vpack.c.bf16 %v2689_v37, %v2688_v54  ;;  %v2371_v16 = vld [vmem:[%s3765_s30 + $0x3d] sm:$0xff] }
 0x1b6   : > { %3583 = vmatmul.msk.bf16.gmra.mxu1 %vm254_vm1, %v1781_v13 }
 0x1b7   : > { %v935_v47 = vpop.f32.mrf.mxu2 }
 0x1b8   : > { %v1034_v63 = vadd.f32 %v935_v47, %v3893_v3  ;;  %v1255_v0 = vpop.f32.mrf.mxu3 }
 0x1ba   : > { %v1354_v55 = vadd.f32 %v1255_v0, %v1034_v63  ;;  %v1577_v40 = vpop.f32.mrf.mxu0 }
 0x1bb   : > { %v4230_v5 = vpop.f32.mrf.mxu1 }
 0x1bc   : > { %v1674_v46 = vadd.f32 %v1575_v7, %v1354_v55 }
 0x1be   : > { %v4233_v12 = vadd.f32 %v1895_v9, %v1674_v46  ;;  %v2370_v46 = vld [vmem:[%s3765_s30 + $0x35] sm:$0xff] }
 0x1bf   : > { %v937_v62 = vpop.f32.mrf.mxu2 }
 0x1c0   : > { %v1035_v23 = vadd.f32 %v937_v62, %v3905_v18  ;;  %v1257_v38 = vpop.f32.mrf.mxu3 }
 0x1c2   : > { %v1355_v3 = vadd.f32 %v1257_v38, %v1035_v23  ;;  %v1580_v29 = vpop.f32.mrf.mxu0  ;;  %v2405_v23 = vpack.c.bf16 %v2371_v16, %v2370_v46  ;;  %v2372_v46 = vld [vmem:[%s3765_s30 + $0x45] sm:$0xff] }
 0x1c3   : > { %v1900_v56 = vpop.f32.mrf.mxu1 }
 0x1c4   : > { %3585 = vmatmul.msk.bf16.vlgmr.msra.gmra.mxu2 %vm254_vm1, %v3925_v43  ;;  %v4241_v7 = vadd.f32 %v1577_v40, %v1355_v3  ;;  %v2690_v43 = vld [vmem:[%s3765_s30 + $0x36] sm:$0xff]  ;;  %v2691_v40 = vld [vmem:[%s3765_s30 + $0x3e] sm:$0xff] }
 0x1c5   : > { %3604 = vmatmul.msk.bf16.vlgmr.msra.gmra.mxu3 %vm254_vm1, %v2404_v32  ;;  %3623 = vmatmul.msk.bf16.vlgmr.msra.gmra.mxu0 %vm254_vm1, %v2724_v58  ;;  %v2725_v38 = vpack.c.bf16 %v2691_v40, %v2690_v43  ;;  %v3677_v58 = vld [vmem:[%s4645_s2 + $0x10] sm:$0xff] }
 0x1c6   : > { %3279 = vmatpush.bf16.msra.mxu1 %v3677_v58  ;;  %v2693_v43 = vld [vmem:[%s3765_s30 + $0x4e] sm:$0xff] }
 0x1c7   : > { %v940_v18 = vpop.f32.mrf.mxu2 }
 0x1c8   : > { %v1036_v13 = vadd.f32 %v940_v18, %v3913_v27  ;;  %v1260_v9 = vpop.f32.mrf.mxu3 }
 0x1ca   : > { %v1356_v47 = vadd.f32 %v1260_v9, %v1036_v13  ;;  %v1582_v63 = vpop.f32.mrf.mxu0 }
 0x1cb   : > { %v4246_v0 = vpop.f32.mrf.mxu1 }
 0x1cc   : > { %v1676_v55 = vadd.f32 %v1580_v29, %v1356_v47 }
 0x1ce   : > { %v4249_v53 = vadd.f32 %v1900_v56, %v1676_v55 }
 0x1cf   : > { %v942_v54 = vpop.f32.mrf.mxu2 }
 0x1d0   : > { %v1037_v37 = vadd.f32 %v942_v54, %v3923_v39  ;;  %v1262_v62 = vpop.f32.mrf.mxu3 }
 0x1d2   : > { %v1357_v32 = vadd.f32 %v1262_v62, %v1037_v37  ;;  %v1585_v27 = vpop.f32.mrf.mxu0 }
 0x1d3   : > { %v1905_v3 = vpop.f32.mrf.mxu1 }
 0x1d4   : > { %3586 = vmatmul.msk.bf16.gmra.mxu2 %vm254_vm1, %v3946_v1  ;;  %v4260_v29 = vadd.f32 %v1582_v63, %v1357_v32  ;;  %v2373_v1 = vld [vmem:[%s3765_s30 + $0x4d] sm:$0xff] }
 0x1d5   : > { %3605 = vmatmul.msk.bf16.gmra.mxu3 %vm254_vm1, %v2405_v23  ;;  %3624 = vmatmul.msk.bf16.gmra.mxu0 %vm254_vm1, %v2725_v38  ;;  %v2692_v63 = vld [vmem:[%s3765_s30 + $0x46] sm:$0xff]  ;;  %v2406_v62 = vpack.c.bf16 %v2373_v1, %v2372_v46  ;;  %v2055_v46 = vld [vmem:[%s3765_s30 + $0x5c] sm:$0xff] }
 0x1d6   : > { %v2726_v23 = vpack.c.bf16 %v2693_v43, %v2692_v63  ;;  %v2694_v63 = vld [vmem:[%s3765_s30 + $0x56] sm:$0xff]  ;;  %v2695_v43 = vld [vmem:[%s3765_s30 + $0x5e] sm:$0xff] }
 0x1d7   : > { %v945_v39 = vpop.f32.mrf.mxu2 }
 0x1d8   : > { %v1038_v56 = vadd.f32 %v945_v39, %v3934_v48  ;;  %v1265_v18 = vpop.f32.mrf.mxu3 }
 0x1da   : > { %v1358_v13 = vadd.f32 %v1265_v18, %v1038_v56  ;;  %v1587_v9 = vpop.f32.mrf.mxu0 }
 0x1db   : > { %v4265_v47 = vpop.f32.mrf.mxu1 }
 0x1dc   : > { %v1678_v55 = vadd.f32 %v1585_v27, %v1358_v13 }
 0x1de   : > { %v4268_v16 = vadd.f32 %v1905_v3, %v1678_v55  ;;  %v2054_v55 = vld [vmem:[%s3765_s30 + $0x54] sm:$0xff] }
 0x1df   : > { %v947_v40 = vpop.f32.mrf.mxu2 }
 0x1e0   : > { %v1039_v54 = vadd.f32 %v947_v40, %v3944_v60  ;;  %v1267_v37 = vpop.f32.mrf.mxu3 }
 0x1e2   : > { %v1359_v48 = vadd.f32 %v1267_v37, %v1039_v54  ;;  %v1590_v38 = vpop.f32.mrf.mxu0 }
 0x1e3   : > { %v1910_v32 = vpop.f32.mrf.mxu1 }
 0x1e4   : > { %3587 = vmatmul.msk.bf16.gmra.mxu2 %vm254_vm1, %v3967_v26  ;;  %v4276_v27 = vadd.f32 %v1587_v9, %v1359_v48  ;;  %v2374_v26 = vld [vmem:[%s3765_s30 + $0x55] sm:$0xff]  ;;  %v2375_v9 = vld [vmem:[%s3765_s30 + $0x5d] sm:$0xff] }
 0x1e5   : > { %3606 = vmatmul.msk.bf16.gmra.mxu3 %vm254_vm1, %v2406_v62  ;;  %3625 = vmatmul.msk.bf16.gmra.mxu0 %vm254_vm1, %v2726_v23  ;;  %v2087_v62 = vpack.c.bf16 %v2055_v46, %v2054_v55  ;;  %v2727_v23 = vpack.c.bf16 %v2695_v43, %v2694_v63  ;;  %v2376_v63 = vld [vmem:[%s3765_s30 + $0x65] sm:$0xff] }
 0x1e7   : > { %v950_v60 = vpop.f32.mrf.mxu2 }
 0x1e8   : > { %v1040_v58 = vadd.f32 %v950_v60, %v3955_v8  ;;  %v1270_v3 = vpop.f32.mrf.mxu3  ;;  %v2407_v8 = vpack.c.bf16 %v2375_v9, %v2374_v26  ;;  %v2056_v26 = vld [vmem:[%s3765_s30 + $0x64] sm:$0xff]  ;;  %v2057_v9 = vld [vmem:[%s3765_s30 + $0x6c] sm:$0xff] }
 0x1ea   : > { %v1360_v39 = vadd.f32 %v1270_v3, %v1040_v58  ;;  %v1592_v56 = vpop.f32.mrf.mxu0 }
 0x1eb   : > { %v4281_v18 = vpop.f32.mrf.mxu1 }
 0x1ec   : > { %v1680_v13 = vadd.f32 %v1590_v38, %v1360_v39 }
 0x1ee   : > { %v4286_v1 = vadd.f32 %v1910_v32, %v1680_v13 }
 0x1ef   : > { %v952_v40 = vpop.f32.mrf.mxu2 }
 0x1f0   : > { %v1041_v54 = vadd.f32 %v952_v40, %v3965_v21  ;;  %v1272_v37 = vpop.f32.mrf.mxu3  ;;  %v3676_v21 = vld [vmem:[%s4645_s2 + $0x8] sm:$0xff] }
 0x1f1   : > { %3280 = vmatpush.bf16.msra.mxu1 %v3676_v21  ;;  %v2377_v40 = vld [vmem:[%s3765_s30 + $0x6d] sm:$0xff] }
 0x1f2   : > { %v1361_v48 = vadd.f32 %v1272_v37, %v1041_v54  ;;  %v1595_v60 = vpop.f32.mrf.mxu0  ;;  %v2696_v54 = vld [vmem:[%s3765_s30 + $0x66] sm:$0xff]  ;;  %v2697_v37 = vld [vmem:[%s3765_s30 + $0x6e] sm:$0xff] }
 0x1f3   : > { %v1915_v38 = vpop.f32.mrf.mxu1  ;;  %v2728_v21 = vpack.c.bf16 %v2697_v37, %v2696_v54  ;;  %v2059_v54 = vld [vmem:[%s3765_s30 + $0x7c] sm:$0xff] }
 0x1f4   : > { %3588 = vmatmul.msk.bf16.gmra.mxu2 %vm254_vm1, %v2087_v62  ;;  %v4293_v32 = vadd.f32 %v1592_v56, %v1361_v48  ;;  %v2408_v48 = vpack.c.bf16 %v2377_v40, %v2376_v63  ;;  %v2058_v40 = vld [vmem:[%s3765_s30 + $0x74] sm:$0xff] }
 0x1f5   : > { %3607 = vmatmul.msk.bf16.gmra.mxu3 %vm254_vm1, %v2407_v8  ;;  %3626 = vmatmul.msk.bf16.gmra.mxu0 %vm254_vm1, %v2727_v23  ;;  %v2378_v37 = vld [vmem:[%s3765_s30 + $0x75] sm:$0xff] }
 0x1f7   : > { %v955_v58 = vpop.f32.mrf.mxu2 }
 0x1f8   : > { %v1042_v3 = vadd.f32 %v955_v58, %v3976_v33  ;;  %v1275_v39 = vpop.f32.mrf.mxu3  ;;  %v2088_v33 = vpack.c.bf16 %v2057_v9, %v2056_v26 }
 0x1fa   : > { %v1362_v13 = vadd.f32 %v1275_v39, %v1042_v3  ;;  %v1597_v55 = vpop.f32.mrf.mxu0 }
 0x1fb   : > { %v4301_v56 = vpop.f32.mrf.mxu1 }
 0x1fc   : > { %v1682_v46 = vadd.f32 %v1595_v60, %v1362_v13 }
 0x1fe   : > { %v4306_v43 = vadd.f32 %v1915_v38, %v1682_v46 }
 0x1ff   : > { %v957_v62 = vpop.f32.mrf.mxu2 }
 0x200   : > { %v1043_v8 = vadd.f32 %v957_v62, %v3986_v49  ;;  %v1277_v23 = vpop.f32.mrf.mxu3 }
 0x202   : > { %v1363_v58 = vadd.f32 %v1277_v23, %v1043_v8  ;;  %v1600_v60 = vpop.f32.mrf.mxu0  ;;  %v2698_v8 = vld [vmem:[%s3765_s30 + $0x76] sm:$0xff]  ;;  %v2699_v23 = vld [vmem:[%s3765_s30 + $0x7e] sm:$0xff] }
 0x203   : > { %v1920_v3 = vpop.f32.mrf.mxu1 }
 0x204   : > { %3589 = vmatmul.msk.bf16.gmra.mxu2 %vm254_vm1, %v2088_v33  ;;  %v4313_v38 = vadd.f32 %v1597_v55, %v1363_v58  ;;  %v2379_v55 = vld [vmem:[%s3765_s30 + $0x7d] sm:$0xff]  ;;  %v2089_v58 = vpack.c.bf16 %v2059_v54, %v2058_v40 }
 0x205   : > { %3608 = vmatmul.msk.bf16.gmra.mxu3 %vm254_vm1, %v2408_v48  ;;  %3627 = vmatmul.msk.bf16.gmra.mxu0 %vm254_vm1, %v2728_v21 }
 0x207   : > { %v960_v49 = vpop.f32.mrf.mxu2 }
 0x208   : > { %v1044_v39 = vadd.f32 %v960_v49, %v3994_v59  ;;  %v1280_v13 = vpop.f32.mrf.mxu3  ;;  %v2409_v59 = vpack.c.bf16 %v2379_v55, %v2378_v37  ;;  %v2729_v49 = vpack.c.bf16 %v2699_v23, %v2698_v8  ;;  %v3675_v37 = vld [vmem:[%s4645_s2] sm:$0xff]  ;;  %v2061_v8 = vld [vmem:[%s3765_s30 + $0x8c] sm:$0xff] }
 0x209   : > { %3281 = vmatpush.bf16.msra.mxu1 %v3675_v37  ;;  %v2380_v23 = vld [vmem:[%s3765_s30 + $0x85] sm:$0xff] }
 0x20a   : > { %v1364_v46 = vadd.f32 %v1280_v13, %v1044_v39  ;;  %v1602_v26 = vpop.f32.mrf.mxu0 }
 0x20b   : > { %v4318_v9 = vpop.f32.mrf.mxu1 }
 0x20c   : > { %v1684_v63 = vadd.f32 %v1600_v60, %v1364_v46 }
 0x20e   : > { %v4323_v62 = vadd.f32 %v1920_v3, %v1684_v63 }
 0x20f   : > { %v962_v33 = vpop.f32.mrf.mxu2 }
 0x210   : > { %v1045_v48 = vadd.f32 %v962_v33, %v4004_v15  ;;  %v1282_v21 = vpop.f32.mrf.mxu3 }
 0x212   : > { %v1365_v39 = vadd.f32 %v1282_v21, %v1045_v48  ;;  %v1605_v13 = vpop.f32.mrf.mxu0  ;;  %v2381_v21 = vld [vmem:[%s3765_s30 + $0x8d] sm:$0xff] }
 0x213   : > { %v1925_v60 = vpop.f32.mrf.mxu1 }
 0x214   : > { %3590 = vmatmul.msk.bf16.gmra.mxu2 %vm254_vm1, %v2089_v58  ;;  %v4330_v3 = vadd.f32 %v1602_v26, %v1365_v39  ;;  %v2060_v26 = vld [vmem:[%s3765_s30 + $0x84] sm:$0xff] }
 0x215   : > { %3609 = vmatmul.msk.bf16.gmra.mxu3 %vm254_vm1, %v2409_v59  ;;  %3628 = vmatmul.msk.bf16.gmra.mxu0 %vm254_vm1, %v2729_v49  ;;  %v2700_v58 = vld [vmem:[%s3765_s30 + $0x86] sm:$0xff]  ;;  %v2701_v59 = vld [vmem:[%s3765_s30 + $0x8e] sm:$0xff] }
 0x217   : > { %v965_v15 = vpop.f32.mrf.mxu2 }
 0x218   : > { %v1046_v46 = vadd.f32 %v965_v15, %v4012_v31  ;;  %v1285_v63 = vpop.f32.mrf.mxu3  ;;  %v2090_v15 = vpack.c.bf16 %v2061_v8, %v2060_v26 }
 0x21a   : > { %v1366_v40 = vadd.f32 %v1285_v63, %v1046_v46  ;;  %v1607_v54 = vpop.f32.mrf.mxu0  ;;  %v2410_v46 = vpack.c.bf16 %v2381_v21, %v2380_v23 }
 0x21b   : > { %v4341_v33 = vpop.f32.mrf.mxu1 }
 0x21c   : > { %v1686_v55 = vadd.f32 %v1605_v13, %v1366_v40  ;;  %4648 = vst [vmem:[#allocation3_spill] sm:$0xff] %v4341_v33  ;;  %v2730_v13 = vpack.c.bf16 %v2701_v59, %v2700_v58  ;;  %v2062_v58 = vld [vmem:[%s3765_s30 + $0x94] sm:$0xff]  ;;  %v2063_v59 = vld [vmem:[%s3765_s30 + $0x9c] sm:$0xff] }
 0x21d   : > { %v2091_v33 = vpack.c.bf16 %v2063_v59, %v2062_v58 }
 0x21e   : > { %v4343_v48 = vadd.f32 %v1925_v60, %v1686_v55 }
 0x21f   : > { %v967_v31 = vpop.f32.mrf.mxu2 }
 0x220   : > { %v1047_v49 = vadd.f32 %v967_v31, %v4022_v50  ;;  %v1287_v39 = vpop.f32.mrf.mxu3  ;;  %v2382_v31 = vld [vmem:[%s3765_s30 + $0x95] sm:$0xff] }
 0x222   : > { %v1367_v63 = vadd.f32 %v1287_v39, %v1047_v49  ;;  %v1610_v40 = vpop.f32.mrf.mxu0  ;;  %v2702_v39 = vld [vmem:[%s3765_s30 + $0x96] sm:$0xff] }
 0x223   : > { %v1930_v37 = vpop.f32.mrf.mxu1 }
 0x224   : > { %3591 = vmatmul.msk.bf16.gmra.mxu2 %vm254_vm1, %v2090_v15  ;;  %v4350_v60 = vadd.f32 %v1607_v54, %v1367_v63  ;;  %v2383_v54 = vld [vmem:[%s3765_s30 + $0x9d] sm:$0xff] }
 0x225   : > { %3610 = vmatmul.msk.bf16.gmra.mxu3 %vm254_vm1, %v2410_v46  ;;  %3629 = vmatmul.msk.bf16.gmra.mxu0 %vm254_vm1, %v2730_v13  ;;  %v2703_v15 = vld [vmem:[%s3765_s30 + $0x9e] sm:$0xff] }
 0x226   : > { %4649 = vst [vmem:[#allocation4_spill] sm:$0xff] %v4350_v60  ;;  %v2411_v60 = vpack.c.bf16 %v2383_v54, %v2382_v31  ;;  %v2064_v54 = vld [vmem:[%s3765_s30 + $0xa4] sm:$0xff] }
 0x227   : > { %v970_v50 = vpop.f32.mrf.mxu2 }
 0x228   : > { %v1048_v55 = vadd.f32 %v970_v50, %v4030_v2  ;;  %v1290_v26 = vpop.f32.mrf.mxu3  ;;  %v2731_v50 = vpack.c.bf16 %v2703_v15, %v2702_v39  ;;  %v2065_v39 = vld [vmem:[%s3765_s30 + $0xac] sm:$0xff] }
 0x229   : > { %v2384_v15 = vld [vmem:[%s3765_s30 + $0xa5] sm:$0xff] }
 0x22a   : > { %v1368_v8 = vadd.f32 %v1290_v26, %v1048_v55  ;;  %v1612_v23 = vpop.f32.mrf.mxu0 }
 0x22b   : > { %v4364_v2 = vpop.f32.mrf.mxu1 }
 0x22c   : > { %v1688_v21 = vadd.f32 %v1610_v40, %v1368_v8  ;;  %4650 = vst [vmem:[#allocation5_spill] sm:$0xff] %v4364_v2 }
 0x22e   : > { %v4358_v49 = vadd.f32 %v1930_v37, %v1688_v21 }
 0x22f   : > { %v972_v63 = vpop.f32.mrf.mxu2 }
 0x230   : > { %v1049_v46 = vadd.f32 %v972_v63, %v4040_v22  ;;  %v1292_v13 = vpop.f32.mrf.mxu3  ;;  %v2704_v63 = vld [vmem:[%s3765_s30 + $0xa6] sm:$0xff] }
 0x232   : > { %v1369_v40 = vadd.f32 %v1292_v13, %v1049_v46  ;;  %v1615_v55 = vpop.f32.mrf.mxu0  ;;  %v2705_v46 = vld [vmem:[%s3765_s30 + $0xae] sm:$0xff] }
 0x233   : > { %v1935_v59 = vpop.f32.mrf.mxu1 }
 0x234   : > { %3592 = vmatmul.msk.bf16.gmra.mxu2 %vm254_vm1, %v2091_v33  ;;  %v4367_v37 = vadd.f32 %v1612_v23, %v1369_v40  ;;  %v2385_v23 = vld [vmem:[%s3765_s30 + $0xad] sm:$0xff]  ;;  %v2092_v40 = vpack.c.bf16 %v2065_v39, %v2064_v54  ;;  %v4390_v39 = vld [vmem:[%s4646_s3] ss:$0 sm:$0xff] }
 0x235   : > { %3611 = vmatmul.msk.bf16.gmra.mxu3 %vm254_vm1, %v2411_v60  ;;  %3630 = vmatmul.msk.bf16.gmra.mxu0 %vm254_vm1, %v2731_v50 }
 0x236   : > { %4651 = vst [vmem:[#allocation6_spill] sm:$0xff] %v4367_v37 }
 0x237   : > { %v975_v22 = vpop.f32.mrf.mxu2 }
 0x238   : > { %v1050_v26 = vadd.f32 %v975_v22, %v4048_v42  ;;  %v1295_v8 = vpop.f32.mrf.mxu3  ;;  %v2412_v42 = vpack.c.bf16 %v2385_v23, %v2384_v15  ;;  %v2732_v22 = vpack.c.bf16 %v2705_v46, %v2704_v63  ;;  %v2066_v15 = vld [vmem:[%s3765_s30 + $0xb4] sm:$0xff]  ;;  %v2067_v23 = vld [vmem:[%s3765_s30 + $0xbc] sm:$0xff] }
 0x239   : > { %v2386_v63 = vld [vmem:[%s3765_s30 + $0xb5] sm:$0xff]  ;;  %v2387_v46 = vld [vmem:[%s3765_s30 + $0xbd] sm:$0xff] }
 0x23a   : > { %v1370_v21 = vadd.f32 %v1295_v8, %v1050_v26  ;;  %v1617_v58 = vpop.f32.mrf.mxu0 }
 0x23c   : > { %v1690_v31 = vadd.f32 %v1615_v55, %v1370_v21 }
 0x23e   : > { %v4375_v33 = vadd.f32 %v1935_v59, %v1690_v31 }
 0x23f   : > { %v977_v13 = vpop.f32.mrf.mxu2 }
 0x240   : > { %4652 = vst [vmem:[#allocation7_spill] sm:$0xff] %v4375_v33  ;;  %v1051_v60 = vadd.f32 %v977_v13, %v4061_v10  ;;  %v1297_v50 = vpop.f32.mrf.mxu3  ;;  %v2706_v13 = vld [vmem:[%s3765_s30 + $0xb6] sm:$0xff] }
 0x242   : > { %v1371_v26 = vadd.f32 %v1297_v50, %v1051_v60  ;;  %v2810_v55 = vpop.f32.mrf.mxu0  ;;  %v2707_v60 = vld [vmem:[%s3765_s30 + $0xbe] sm:$0xff] }
 0x244   : > { %3593 = vmatmul.msk.bf16.gmra.mxu2 %vm254_vm1, %v2092_v40  ;;  %v4382_v8 = vadd.f32 %v1617_v58, %v1371_v26  ;;  %v2733_v26 = vpack.c.bf16 %v2707_v60, %v2706_v13 }
 0x245   : > { %3612 = vmatmul.msk.bf16.gmra.mxu3 %vm254_vm1, %v2412_v42  ;;  %3631 = vmatmul.msk.bf16.gmra.mxu0 %vm254_vm1, %v2732_v22  ;;  %v2413_v22 = vpack.c.bf16 %v2387_v46, %v2386_v63 }
 0x246   : > { %4653 = vst [vmem:[#allocation8_spill] sm:$0xff] %v4382_v8 }
 0x247   : > { %v2170_v10 = vpop.f32.mrf.mxu2 }
 0x248   : > { %v2296_v21 = vadd.f32 %v2170_v10, %v4069_v44  ;;  %v2490_v59 = vpop.f32.mrf.mxu3  ;;  %v2093_v44 = vpack.c.bf16 %v2067_v23, %v2066_v15 }
 0x24a   : > { %v2616_v31 = vadd.f32 %v2490_v59, %v2296_v21  ;;  %v2812_v54 = vpop.f32.mrf.mxu0 }
 0x24c   : > { %v2936_v58 = vadd.f32 %v2810_v55, %v2616_v31 }
 0x24e   : > { %v3046_v10 = vadd.f32 %v4390_v39, %v2936_v58 }
 0x24f   : > { %v2172_v50 = vpop.f32.mrf.mxu2 }
 0x250   : > { %v2297_v40 = vadd.f32 %v2172_v50, %v4080_v6  ;;  %v2492_v42 = vpop.f32.mrf.mxu3  ;;  %v3118_v55 = vmul.f32 0.1, %v3046_v10  ;;  %vm3082_vm2 = vcmp.ge.f32.partialorder %v3046_v10, 0.0  ;;  %v2068_v50 = vld [vmem:[%s3765_s30 + $0xc4] sm:$0xff] }
 0x252   : > { %v2617_v21 = vadd.f32 %v2492_v42, %v2297_v40  ;;  %v2815_v59 = vpop.f32.mrf.mxu0  ;;  %v3154_v63 = vsel %vm3082_vm2, %v3046_v10, %v3118_v55  ;;  %v2069_v40 = vld [vmem:[%s3765_s30 + $0xcc] sm:$0xff] }
 0x253   : > { %v2388_v42 = vld [vmem:[%s3765_s30 + $0xc5] sm:$0xff]  ;;  %v2094_v37 = vpack.c.bf16 %v2069_v40, %v2068_v50  ;;  %v2071_v50 = vld [vmem:[%s3765_s30 + $0xdc] sm:$0xff] }
 0x254   : > { %v2937_v8 = vadd.f32 %v2812_v54, %v2617_v21  ;;  %3594 = vmatmul.msk.bf16.gmra.mxu2 %vm254_vm1, %v2093_v44  ;;  %v2389_v44 = vld [vmem:[%s3765_s30 + $0xcd] sm:$0xff]  ;;  %v2390_v40 = vld [vmem:[%s3765_s30 + $0xd5] sm:$0xff] }
 0x255   : > { %3613 = vmatmul.msk.bf16.gmra.mxu3 %vm254_vm1, %v2413_v22  ;;  %3632 = vmatmul.msk.bf16.gmra.mxu0 %vm254_vm1, %v2733_v26  ;;  %v2708_v22 = vld [vmem:[%s3765_s30 + $0xc6] sm:$0xff]  ;;  %v2709_v26 = vld [vmem:[%s3765_s30 + $0xce] sm:$0xff] }
 0x256   : > { %v3047_v6 = vadd.f32 %v4390_v39, %v2937_v8 }
 0x257   : > { %v2175_v31 = vpop.f32.mrf.mxu2 }
 0x258   : > { %vm3083_vm3 = vcmp.ge.f32.partialorder %v3047_v6, 0.0  ;;  %v3119_v15 = vmul.f32 0.1, %v3047_v6  ;;  %v2298_v54 = vadd.f32 %v2175_v31, %v4085_v41  ;;  %v2495_v23 = vpop.f32.mrf.mxu3  ;;  %v2414_v41 = vpack.c.bf16 %v2389_v44, %v2388_v42  ;;  %v2710_v44 = vld [vmem:[%s3765_s30 + $0xd6] sm:$0xff] }
 0x259   : > { %v2734_v31 = vpack.c.bf16 %v2709_v26, %v2708_v22  ;;  %v2711_v22 = vld [vmem:[%s3765_s30 + $0xde] sm:$0xff] }
 0x25a   : > { %v3155_v58 = vsel %vm3083_vm3, %v3047_v6, %v3119_v15  ;;  %v2618_v46 = vadd.f32 %v2495_v23, %v2298_v54  ;;  %v2817_v13 = vpop.f32.mrf.mxu0 }
 0x25b   : > { %v3190_v60 = vpack.c.bf16 %v3155_v58, %v3154_v63 }
 0x25c   : > { %v2938_v8 = vadd.f32 %v2815_v59, %v2618_v46 }
 0x25d   : > { %3282 = vmatmul.bf16.vlgmr.msra.gmra.mxu1 %v3190_v60  ;;  %v2070_v60 = vld [vmem:[%s3765_s30 + $0xd4] sm:$0xff] }
 0x25e   : > { %v3048_v10 = vadd.f32 %v4390_v39, %v2938_v8  ;;  %v2391_v8 = vld [vmem:[%s3765_s30 + $0xdd] sm:$0xff] }
 0x25f   : > { %v2177_v21 = vpop.f32.mrf.mxu2 }
 0x260   : > { %v2299_v33 = vadd.f32 %v2177_v21, %v4099_v30  ;;  %v2497_v2 = vpop.f32.mrf.mxu3  ;;  %v3120_v59 = vmul.f32 0.1, %v3048_v10  ;;  %vm3084_vm4 = vcmp.ge.f32.partialorder %v3048_v10, 0.0 }
 0x262   : > { %v2619_v55 = vadd.f32 %v2497_v2, %v2299_v33  ;;  %v2820_v6 = vpop.f32.mrf.mxu0  ;;  %v3156_v58 = vsel %vm3084_vm4, %v3048_v10, %v3120_v59 }
 0x264   : > { %v2939_v15 = vadd.f32 %v2817_v13, %v2619_v55  ;;  %3595 = vmatmul.msk.bf16.gmra.mxu2 %vm254_vm1, %v2094_v37  ;;  %v2735_v55 = vpack.c.bf16 %v2711_v22, %v2710_v44  ;;  %v2712_v44 = vld [vmem:[%s3765_s30 + $0xe6] sm:$0xff]  ;;  %v2713_v22 = vld [vmem:[%s3765_s30 + $0xee] sm:$0xff] }
 0x265   : > { %3614 = vmatmul.msk.bf16.gmra.mxu3 %vm254_vm1, %v2414_v41  ;;  %3633 = vmatmul.msk.bf16.gmra.mxu0 %vm254_vm1, %v2734_v31  ;;  %v2095_v41 = vpack.c.bf16 %v2071_v50, %v2070_v60  ;;  %v2415_v31 = vpack.c.bf16 %v2391_v8, %v2390_v40  ;;  %v2072_v60 = vld [vmem:[%s3765_s30 + $0xe4] sm:$0xff]  ;;  %v2073_v50 = vld [vmem:[%s3765_s30 + $0xec] sm:$0xff] }
 0x266   : > { %v3049_v30 = vadd.f32 %v4390_v39, %v2939_v15  ;;  %v2392_v40 = vld [vmem:[%s3765_s30 + $0xe5] sm:$0xff]  ;;  %v2393_v8 = vld [vmem:[%s3765_s30 + $0xed] sm:$0xff] }
 0x267   : > { %v2180_v54 = vpop.f32.mrf.mxu2 }
 0x268   : > { %v2300_v2 = vadd.f32 %v2180_v54, %v4104_v25  ;;  %v2500_v33 = vpop.f32.mrf.mxu3  ;;  %vm3085_vm5 = vcmp.ge.f32.partialorder %v3049_v30, 0.0  ;;  %v3121_v37 = vmul.f32 0.1, %v3049_v30 }
 0x26a   : > { %v2620_v23 = vadd.f32 %v2500_v33, %v2300_v2  ;;  %v2822_v63 = vpop.f32.mrf.mxu0  ;;  %v3157_v46 = vsel %vm3085_vm5, %v3049_v30, %v3121_v37 }
 0x26b   : > { %v3191_v13 = vpack.c.bf16 %v3157_v46, %v3156_v58 }
 0x26c   : > { %v2940_v42 = vadd.f32 %v2820_v6, %v2620_v23 }
 0x26d   : > { %3287 = vmatmul.bf16.gmra.mxu1 %v3191_v13 }
 0x26e   : > { %v3050_v15 = vadd.f32 %v4390_v39, %v2940_v42 }
 0x26f   : > { %v2182_v26 = vpop.f32.mrf.mxu2 }
 0x270   : > { %v2301_v25 = vadd.f32 %v2182_v26, %v4115_v51  ;;  %v2502_v21 = vpop.f32.mrf.mxu3  ;;  %v3122_v6 = vmul.f32 0.1, %v3050_v15  ;;  %vm3086_vm6 = vcmp.ge.f32.partialorder %v3050_v15, 0.0 }
 0x272   : > { %v2621_v10 = vadd.f32 %v2502_v21, %v2301_v25  ;;  %v2825_v59 = vpop.f32.mrf.mxu0  ;;  %v3158_v58 = vsel %vm3086_vm6, %v3050_v15, %v3122_v6  ;;  %v2096_v21 = vpack.c.bf16 %v2073_v50, %v2072_v60  ;;  %v2394_v60 = vld [vmem:[%s3765_s30 + $0xf5] sm:$0xff] }
 0x274   : > { %v2941_v30 = vadd.f32 %v2822_v63, %v2621_v10  ;;  %3596 = vmatmul.msk.bf16.gmra.mxu2 %vm254_vm1, %v2095_v41  ;;  %v2416_v41 = vpack.c.bf16 %v2393_v8, %v2392_v40  ;;  %v2395_v40 = vld [vmem:[%s3765_s30 + $0xfd] sm:$0xff] }
 0x275   : > { %3615 = vmatmul.msk.bf16.gmra.mxu3 %vm254_vm1, %v2415_v31  ;;  %3634 = vmatmul.msk.bf16.gmra.mxu0 %vm254_vm1, %v2735_v55  ;;  %v2736_v31 = vpack.c.bf16 %v2713_v22, %v2712_v44  ;;  %v2715_v8 = vld [vmem:[%s3765_s30 + $0xfe] sm:$0xff] }
 0x276   : > { %v3051_v51 = vadd.f32 %v4390_v39, %v2941_v30 }
 0x277   : > { %v2185_v54 = vpop.f32.mrf.mxu2 }
 0x278   : > { %v2302_v2 = vadd.f32 %v2185_v54, %v4120_v34  ;;  %v2505_v33 = vpop.f32.mrf.mxu3  ;;  %vm3087_vm7 = vcmp.ge.f32.partialorder %v3051_v51, 0.0  ;;  %v3123_v37 = vmul.f32 0.1, %v3051_v51 }
 0x27a   : > { %v2622_v23 = vadd.f32 %v2505_v33, %v2302_v2  ;;  %v2827_v63 = vpop.f32.mrf.mxu0  ;;  %v3159_v46 = vsel %vm3087_vm7, %v3051_v51, %v3123_v37 }
 0x27b   : > { %v3192_v13 = vpack.c.bf16 %v3159_v46, %v3158_v58  ;;  %v2074_v46 = vld [vmem:[%s3765_s30 + $0xf4] sm:$0xff] }
 0x27c   : > { %v2942_v42 = vadd.f32 %v2825_v59, %v2622_v23 }
 0x27d   : > { %3292 = vmatmul.bf16.gmra.mxu1 %v3192_v13  ;;  %v2075_v13 = vld [vmem:[%s3765_s30 + $0xfc] sm:$0xff] }
 0x27e   : > { %v3052_v55 = vadd.f32 %v4390_v39, %v2942_v42  ;;  %v2714_v42 = vld [vmem:[%s3765_s30 + $0xf6] sm:$0xff] }
 0x27f   : > { %v2187_v26 = vpop.f32.mrf.mxu2 }
 0x280   : > { %v2303_v34 = vadd.f32 %v2187_v26, %v4131_v14  ;;  %v2507_v25 = vpop.f32.mrf.mxu3  ;;  %v3124_v59 = vmul.f32 0.1, %v3052_v55  ;;  %vm3088_vm8 = vcmp.ge.f32.partialorder %v3052_v55, 0.0  ;;  %v2097_v26 = vpack.c.bf16 %v2075_v13, %v2074_v46  ;;  %v2397_v46 = vld [vmem:[%s3765_s30 + $0x10d] sm:$0xff] }
 0x281   : > { %v2716_v13 = vld [vmem:[%s3765_s30 + $0x106] sm:$0xff] }
 0x282   : > { %v2623_v15 = vadd.f32 %v2507_v25, %v2303_v34  ;;  %v2830_v10 = vpop.f32.mrf.mxu0  ;;  %v3160_v23 = vsel %vm3088_vm8, %v3052_v55, %v3124_v59  ;;  %v2417_v34 = vpack.c.bf16 %v2395_v40, %v2394_v60  ;;  %v2737_v25 = vpack.c.bf16 %v2715_v8, %v2714_v42  ;;  %v2717_v60 = vld [vmem:[%s3765_s30 + $0x10e] sm:$0xff] }
 0x284   : > { %v2943_v30 = vadd.f32 %v2827_v63, %v2623_v15  ;;  %3597 = vmatmul.msk.bf16.gmra.mxu2 %vm254_vm1, %v2096_v21 }
 0x285   : > { %3616 = vmatmul.msk.bf16.gmra.mxu3 %vm254_vm1, %v2416_v41  ;;  %3635 = vmatmul.msk.bf16.gmra.mxu0 %vm254_vm1, %v2736_v31 }
 0x286   : > { %v3053_v14 = vadd.f32 %v4390_v39, %v2943_v30 }
 0x287   : > { %v2190_v6 = vpop.f32.mrf.mxu2 }
 0x288   : > { %v2304_v51 = vadd.f32 %v2190_v6, %v4139_v61  ;;  %v2510_v54 = vpop.f32.mrf.mxu3  ;;  %vm3089_vm9 = vcmp.ge.f32.partialorder %v3053_v14, 0.0  ;;  %v3125_v2 = vmul.f32 0.1, %v3053_v14 }
 0x28a   : > { %v2624_v33 = vadd.f32 %v2510_v54, %v2304_v51  ;;  %v2832_v37 = vpop.f32.mrf.mxu0  ;;  %v3161_v63 = vsel %vm3089_vm9, %v3053_v14, %v3125_v2 }
 0x28b   : > { %v3193_v58 = vpack.c.bf16 %v3161_v63, %v3160_v23  ;;  %v2077_v23 = vld [vmem:[%s3765_s30 + $0x10c] sm:$0xff] }
 0x28c   : > { %v2944_v50 = vadd.f32 %v2830_v10, %v2624_v33  ;;  %v2396_v63 = vld [vmem:[%s3765_s30 + $0x105] sm:$0xff] }
 0x28d   : > { %3297 = vmatmul.bf16.gmra.mxu1 %v3193_v58  ;;  %v2418_v8 = vpack.c.bf16 %v2397_v46, %v2396_v63 }
 0x28e   : > { %v3054_v21 = vadd.f32 %v4390_v39, %v2944_v50 }
 0x28f   : > { %v2192_v44 = vpop.f32.mrf.mxu2 }
 0x290   : > { %v2305_v61 = vadd.f32 %v2192_v44, %v4150_v36  ;;  %v2512_v22 = vpop.f32.mrf.mxu3  ;;  %v3126_v15 = vmul.f32 0.1, %v3054_v21  ;;  %vm3090_vm10 = vcmp.ge.f32.partialorder %v3054_v21, 0.0  ;;  %v2738_v44 = vpack.c.bf16 %v2717_v60, %v2716_v13 }
 0x292   : > { %v2625_v41 = vadd.f32 %v2512_v22, %v2305_v61  ;;  %v2835_v31 = vpop.f32.mrf.mxu0  ;;  %v3162_v54 = vsel %vm3090_vm10, %v3054_v21, %v3126_v15 }
 0x294   : > { %v2945_v55 = vadd.f32 %v2832_v37, %v2625_v41  ;;  %3598 = vmatmul.msk.bf16.gmra.mxu2 %vm254_vm1, %v2097_v26  ;;  %v2076_v37 = vld [vmem:[%s3765_s30 + $0x104] sm:$0xff] }
 0x295   : > { %3617 = vmatmul.msk.bf16.gmra.mxu3 %vm254_vm1, %v2417_v34  ;;  %3636 = vmatmul.msk.bf16.gmra.mxu0 %vm254_vm1, %v2737_v25  ;;  %v2098_v42 = vpack.c.bf16 %v2077_v23, %v2076_v37  ;;  %v2719_v37 = vld [vmem:[%s3765_s30 + $0x11e] sm:$0xff] }
 0x296   : > { %v3055_v36 = vadd.f32 %v4390_v39, %v2945_v55 }
 0x297   : > { %v2195_v10 = vpop.f32.mrf.mxu2 }
 0x298   : > { %v2306_v30 = vadd.f32 %v2195_v10, %v4155_v28  ;;  %v2515_v59 = vpop.f32.mrf.mxu3  ;;  %vm3091_vm11 = vcmp.ge.f32.partialorder %v3055_v36, 0.0  ;;  %v3127_v14 = vmul.f32 0.1, %v3055_v36 }
 0x29a   : > { %v2626_v6 = vadd.f32 %v2515_v59, %v2306_v30  ;;  %v2837_v51 = vpop.f32.mrf.mxu0  ;;  %v3163_v2 = vsel %vm3091_vm11, %v3055_v36, %v3127_v14  ;;  %v2078_v14 = vld [vmem:[%s3765_s30 + $0x114] sm:$0xff] }
 0x29b   : > { %v3194_v33 = vpack.c.bf16 %v3163_v2, %v3162_v54  ;;  %v1989_v54 = vadd.f32 %v4173_v19, %v4185_v45 }
 0x29c   : > { %v2946_v58 = vadd.f32 %v2835_v31, %v2626_v6  ;;  %v2079_v6 = vld [vmem:[%s3765_s30 + $0x11c] sm:$0xff] }
 0x29d   : > { %3302 = vmatmul.bf16.gmra.mxu1 %v3194_v33  ;;  %v2399_v33 = vld [vmem:[%s3765_s30 + $0x11d] sm:$0xff]  ;;  %v2099_v46 = vpack.c.bf16 %v2079_v6, %v2078_v14 }
 0x29e   : > { %v3056_v61 = vadd.f32 %v4390_v39, %v2946_v58 }
 0x29f   : > { %v2197_v50 = vpop.f32.mrf.mxu2 }
 0x2a0   : > { %v2307_v28 = vadd.f32 %v2197_v50, %v4166_v11  ;;  %v2517_v40 = vpop.f32.mrf.mxu3  ;;  %v3128_v25 = vmul.f32 0.1, %v3056_v61  ;;  %vm3092_vm12 = vcmp.ge.f32.partialorder %v3056_v61, 0.0 }
 0x2a2   : > { %v2627_v22 = vadd.f32 %v2517_v40, %v2307_v28  ;;  %v2840_v26 = vpop.f32.mrf.mxu0  ;;  %v3164_v10 = vsel %vm3092_vm12, %v3056_v61, %v3128_v25 }
 0x2a4   : > { %v2947_v34 = vadd.f32 %v2837_v51, %v2627_v22  ;;  %3599 = vmatmul.msk.bf16.gmra.mxu2 %vm254_vm1, %v2098_v42  ;;  %v2398_v51 = vld [vmem:[%s3765_s30 + $0x115] sm:$0xff] }
 0x2a5   : > { %3618 = vmatmul.msk.bf16.gmra.mxu3 %vm254_vm1, %v2418_v8  ;;  %3637 = vmatmul.msk.bf16.gmra.mxu0 %vm254_vm1, %v2738_v44  ;;  %v2419_v13 = vpack.c.bf16 %v2399_v33, %v2398_v51 }
 0x2a6   : > { %v3057_v11 = vadd.f32 %v4390_v39, %v2947_v34 }
 0x2a7   : > { %v2200_v21 = vpop.f32.mrf.mxu2 }
 0x2a8   : > { %v2308_v41 = vadd.f32 %v2200_v21, %v4176_v20  ;;  %v2520_v31 = vpop.f32.mrf.mxu3  ;;  %vm3093_vm13 = vcmp.ge.f32.partialorder %v3057_v11, 0.0  ;;  %v3129_v55 = vmul.f32 0.1, %v3057_v11  ;;  %v2718_v20 = vld [vmem:[%s3765_s30 + $0x116] sm:$0xff] }
 0x2a9   : > { %v2739_v60 = vpack.c.bf16 %v2719_v37, %v2718_v20 }
 0x2aa   : > { %v2628_v15 = vadd.f32 %v2520_v31, %v2308_v41  ;;  %v2842_v36 = vpop.f32.mrf.mxu0  ;;  %v3165_v30 = vsel %vm3093_vm13, %v3057_v11, %v3129_v55  ;;  %v2080_v41 = vld [vmem:[%s3765_s30 + $0x124] sm:$0xff]  ;;  %v2081_v31 = vld [vmem:[%s3765_s30 + $0x12c] sm:$0xff] }
 0x2ab   : > { %v3195_v59 = vpack.c.bf16 %v3165_v30, %v3164_v10  ;;  %v2400_v55 = vld [vmem:[%s3765_s30 + $0x125] sm:$0xff]  ;;  %v2401_v10 = vld [vmem:[%s3765_s30 + $0x12d] sm:$0xff]  ;;  %v2100_v51 = vpack.c.bf16 %v2081_v31, %v2080_v41 }
 0x2ac   : > { %v2948_v2 = vadd.f32 %v2840_v26, %v2628_v15  ;;  %v1991_v15 = vadd.f32 %v4191_v17, %v4203_v4  ;;  %v2720_v30 = vld [vmem:[%s3765_s30 + $0x126] sm:$0xff] }
 0x2ad   : > { %3307 = vmatmul.bf16.gmra.mxu1 %v3195_v59  ;;  %v2721_v59 = vld [vmem:[%s3765_s30 + $0x12e] sm:$0xff] }
 0x2ae   : > { %v3058_v50 = vadd.f32 %v4390_v39, %v2948_v2  ;;  %v2740_v2 = vpack.c.bf16 %v2721_v59, %v2720_v30 }
 0x2af   : > { %v2202_v23 = vpop.f32.mrf.mxu2 }
 0x2b0   : > { %v2309_v63 = vadd.f32 %v2202_v23, %v1989_v54  ;;  %v2522_v58 = vpop.f32.mrf.mxu3  ;;  %v3130_v19 = vmul.f32 0.1, %v3058_v50  ;;  %vm3094_vm14 = vcmp.ge.f32.partialorder %v3058_v50, 0.0  ;;  %v2420_v54 = vpack.c.bf16 %v2401_v10, %v2400_v55  ;;  %v4506_v55 = vpop.f32.mrf.mxu1 }
 0x2b2   : > { %v2629_v28 = vadd.f32 %v2522_v58, %v2309_v63  ;;  %v2845_v40 = vpop.f32.mrf.mxu0  ;;  %v3166_v25 = vsel %vm3094_vm14, %v3058_v50, %v3130_v19  ;;  %v2082_v19 = vld [vmem:[%s3765_s30 + $0x134] sm:$0xff] }
 0x2b4   : > { %v2949_v42 = vadd.f32 %v2842_v36, %v2629_v28  ;;  %3600 = vmatmul.msk.bf16.gmra.mxu2 %vm254_vm1, %v2099_v46 }
 0x2b5   : > { %3619 = vmatmul.msk.bf16.gmra.mxu3 %vm254_vm1, %v2419_v13  ;;  %3638 = vmatmul.msk.bf16.gmra.mxu0 %vm254_vm1, %v2739_v60 }
 0x2b6   : > { %v3059_v45 = vadd.f32 %v4390_v39, %v2949_v42 }
 0x2b7   : > { %v2205_v8 = vpop.f32.mrf.mxu2 }
 0x2b8   : > { %v3131_v44 = vmul.f32 0.1, %v3059_v45  ;;  %v2310_v61 = vadd.f32 %v2205_v8, %v4194_v24  ;;  %v2525_v22 = vpop.f32.mrf.mxu3  ;;  %vm3095_vm15 = vcmp.ge.f32.partialorder %v3059_v45, 0.0  ;;  %v2402_v8 = vld [vmem:[%s3765_s30 + $0x135] sm:$0xff] }
 0x2ba   : > { %v2630_v26 = vadd.f32 %v2525_v22, %v2310_v61  ;;  %v2847_v34 = vpop.f32.mrf.mxu0  ;;  %v3167_v11 = vsel %vm3095_vm15, %v3059_v45, %v3131_v44  ;;  %v2083_v45 = vld [vmem:[%s3765_s30 + $0x13c] sm:$0xff]  ;;  %v1993_v44 = vadd.f32 %v4209_v52, %v4224_v35 }
 0x2bb   : > { %v3196_v21 = vpack.c.bf16 %v3167_v11, %v3166_v25  ;;  %v2403_v22 = vld [vmem:[%s3765_s30 + $0x13d] sm:$0xff] }
 0x2bc   : > { %v2950_v36 = vadd.f32 %v2845_v40, %v2630_v26  ;;  %v2722_v26 = vld [vmem:[%s3765_s30 + $0x136] sm:$0xff]  ;;  %v2421_v41 = vpack.c.bf16 %v2403_v22, %v2402_v8 }
 0x2bd   : > { %3312 = vmatmul.bf16.gmra.mxu1 %v3196_v21  ;;  %v2101_v21 = vpack.c.bf16 %v2083_v45, %v2082_v19 }
 0x2be   : > { %v3060_v33 = vadd.f32 %v4390_v39, %v2950_v36 }
 0x2bf   : > { %v2207_v24 = vpop.f32.mrf.mxu2 }
 0x2c0   : > { %v2311_v14 = vadd.f32 %v2207_v24, %v1991_v15  ;;  %v2527_v6 = vpop.f32.mrf.mxu3  ;;  %v3132_v17 = vmul.f32 0.1, %v3060_v33  ;;  %vm3096_vm0 = vcmp.ge.f32.partialorder %v3060_v33, 0.0  ;;  %v4517_v24 = vld [vmem:[%s4646_s3 + $0x1] ss:$0 sm:$0xff] }
 0x2c2   : > { %v2631_v20 = vadd.f32 %v2527_v6, %v2311_v14  ;;  %v2850_v37 = vpop.f32.mrf.mxu0  ;;  %v3168_v28 = vsel %vm3096_vm0, %v3060_v33, %v3132_v17 }
 0x2c4   : > { %v2951_v23 = vadd.f32 %v2847_v34, %v2631_v20  ;;  %3601 = vmatmul.msk.bf16.gmra.mxu2 %vm254_vm1, %v2100_v51  ;;  %v2723_v34 = vld [vmem:[%s3765_s30 + $0x13e] sm:$0xff]  ;;  %s3686_s30 = smul.u32 288, %s4661_s16 }
 0x2c5   : > { %3620 = vmatmul.msk.bf16.gmra.mxu3 %vm254_vm1, %v2420_v54  ;;  %3639 = vmatmul.msk.bf16.gmra.mxu0 %vm254_vm1, %v2740_v2  ;;  %v2741_v31 = vpack.c.bf16 %v2723_v34, %v2722_v26 }
 0x2c6   : > { %v3061_v4 = vadd.f32 %v4390_v39, %v2951_v23  ;;  %s4523_s12 = scalar_lea.vmem %s4647_s4, %s3686_s30 }
 0x2c7   : > { %v2210_v63 = vpop.f32.mrf.mxu2 }
 0x2c8   : > { %v3133_v58 = vmul.f32 0.1, %v3061_v4  ;;  %v2312_v46 = vadd.f32 %v2210_v63, %v4213_v57  ;;  %v2530_v13 = vpop.f32.mrf.mxu3  ;;  %vm3097_vm2 = vcmp.ge.f32.partialorder %v3061_v4, 0.0 }
 0x2ca   : > { %v2632_v60 = vadd.f32 %v2530_v13, %v2312_v46  ;;  %v2852_v50 = vpop.f32.mrf.mxu0  ;;  %v3169_v40 = vsel %vm3097_vm2, %v3061_v4, %v3133_v58 }
 0x2cb   : > { %v3197_v42 = vpack.c.bf16 %v3169_v40, %v3168_v28 }
 0x2cc   : > { %v2952_v61 = vadd.f32 %v2850_v37, %v2632_v60 }
 0x2cd   : > { %3317 = vmatmul.bf16.gmra.mxu1 %v3197_v42 }
 0x2ce   : > { %v3062_v15 = vadd.f32 %v4390_v39, %v2952_v61 }
 0x2cf   : > { %v2212_v57 = vpop.f32.mrf.mxu2 }
 0x2d0   : > { %v2313_v25 = vadd.f32 %v2212_v57, %v1993_v44  ;;  %v2532_v11 = vpop.f32.mrf.mxu3  ;;  %v3134_v52 = vmul.f32 0.1, %v3062_v15  ;;  %vm3098_vm3 = vcmp.ge.f32.partialorder %v3062_v15, 0.0 }
 0x2d2   : > { %v2633_v36 = vadd.f32 %v2532_v11, %v2313_v25  ;;  %v2855_v10 = vpop.f32.mrf.mxu0  ;;  %v3170_v20 = vsel %vm3098_vm3, %v3062_v15, %v3134_v52 }
 0x2d4   : > { %v2953_v30 = vadd.f32 %v2852_v50, %v2633_v36  ;;  %3602 = vmatmul.msk.bf16.gmra.mxu2 %vm254_vm1, %v2101_v21  ;;  %v1997_v21 = vadd.f32 %v4246_v0, %v4260_v29 }
 0x2d5   : > { %3621 = vmatmul.msk.bf16.gmra.mxu3 %vm254_vm1, %v2421_v41  ;;  %3640 = vmatmul.msk.bf16.gmra.mxu0 %vm254_vm1, %v2741_v31 }
 0x2d6   : > { %v3063_v35 = vadd.f32 %v4390_v39, %v2953_v30 }
 0x2d7   : > { %v2215_v59 = vpop.f32.mrf.mxu2 }
 0x2d8   : > { %v3135_v14 = vmul.f32 0.1, %v3063_v35  ;;  %v2314_v6 = vadd.f32 %v2215_v59, %v4233_v12  ;;  %v2535_v51 = vpop.f32.mrf.mxu3  ;;  %vm3099_vm4 = vcmp.ge.f32.partialorder %v3063_v35, 0.0  ;;  %v1995_v12 = vadd.f32 %v4230_v5, %v4241_v7 }
 0x2da   : > { %v2634_v54 = vadd.f32 %v2535_v51, %v2314_v6  ;;  %v3283_v2 = vpop.f32.mrf.mxu1  ;;  %v2857_v33 = vpop.f32.mrf.mxu0  ;;  %v3171_v37 = vsel %vm3099_vm4, %v3063_v35, %v3135_v14 }
 0x2db   : > { %v3284_v23 = vadd.f32 %v4517_v24, %v3283_v2  ;;  %v3198_v17 = vpack.c.bf16 %v3171_v37, %v3170_v20 }
 0x2dc   : > { %v2954_v4 = vadd.f32 %v2855_v10, %v2634_v54 }
 0x2dd   : > { %3373 = vst [vmem:[%s4523_s12] sm:$0xff] %v3284_v23  ;;  %3322 = vmatmul.bf16.gmra.mxu1 %v3198_v17 }
 0x2de   : > { %v3064_v13 = vadd.f32 %v4390_v39, %v2954_v4  ;;  %v1999_v4 = vadd.f32 %v4265_v47, %v4276_v27 }
 0x2df   : > { %v2217_v63 = vpop.f32.mrf.mxu2 }
 0x2e0   : > { %v2315_v58 = vadd.f32 %v2217_v63, %v1995_v12  ;;  %v2537_v46 = vpop.f32.mrf.mxu3  ;;  %v3136_v19 = vmul.f32 0.1, %v3064_v13  ;;  %vm3100_vm1 = vcmp.ge.f32.partialorder %v3064_v13, 0.0 }
 0x2e2   : > { %v2635_v60 = vadd.f32 %v2537_v46, %v2315_v58  ;;  %v3285_v50 = vpop.f32.mrf.mxu1  ;;  %v2860_v28 = vpop.f32.mrf.mxu0  ;;  %v3172_v34 = vsel %vm3100_vm1, %v3064_v13, %v3136_v19 }
 0x2e3   : > { %v3286_v40 = vadd.f32 %v4517_v24, %v3285_v50 }
 0x2e4   : > { %v2955_v42 = vadd.f32 %v2857_v33, %v2635_v60 }
 0x2e5   : > { %3374 = vst [vmem:[%s4523_s12 + $0x8] sm:$0xff] %v3286_v40 }
 0x2e6   : > { %v3065_v45 = vadd.f32 %v4390_v39, %v2955_v42 }
 0x2e7   : > { %v2220_v8 = vpop.f32.mrf.mxu2 }
 0x2e8   : > { %v3137_v5 = vmul.f32 0.1, %v3065_v45  ;;  %v2316_v7 = vadd.f32 %v2220_v8, %v4249_v53  ;;  %v2540_v44 = vpop.f32.mrf.mxu3  ;;  %vm3101_vm5 = vcmp.ge.f32.partialorder %v3065_v45, 0.0 }
 0x2ea   : > { %v2636_v61 = vadd.f32 %v2540_v44, %v2316_v7  ;;  %v3288_v22 = vpop.f32.mrf.mxu1  ;;  %v2862_v26 = vpop.f32.mrf.mxu0  ;;  %v3173_v57 = vsel %vm3101_vm5, %v3065_v45, %v3137_v5 }
 0x2eb   : > { %v3289_v25 = vadd.f32 %v4517_v24, %v3288_v22  ;;  %v3199_v11 = vpack.c.bf16 %v3173_v57, %v3172_v34 }
 0x2ec   : > { %v2956_v41 = vadd.f32 %v2860_v28, %v2636_v61 }
 0x2ed   : > { %3375 = vst [vmem:[%s4523_s12 + $0x10] sm:$0xff] %v3289_v25  ;;  %3327 = vmatmul.bf16.gmra.mxu1 %v3199_v11  ;;  %v2001_v25 = vadd.f32 %v4281_v18, %v4293_v32 }
 0x2ee   : > { %v3066_v36 = vadd.f32 %v4390_v39, %v2956_v41 }
 0x2ef   : > { %v2222_v31 = vpop.f32.mrf.mxu2 }
 0x2f0   : > { %v2317_v15 = vadd.f32 %v2222_v31, %v1997_v21  ;;  %v2542_v53 = vpop.f32.mrf.mxu3  ;;  %v3138_v14 = vmul.f32 0.1, %v3066_v36  ;;  %vm3102_vm6 = vcmp.ge.f32.partialorder %v3066_v36, 0.0 }
 0x2f2   : > { %v2637_v10 = vadd.f32 %v2542_v53, %v2317_v15  ;;  %v3290_v30 = vpop.f32.mrf.mxu1  ;;  %v2865_v52 = vpop.f32.mrf.mxu0  ;;  %v3174_v37 = vsel %vm3102_vm6, %v3066_v36, %v3138_v14 }
 0x2f3   : > { %v3291_v35 = vadd.f32 %v4517_v24, %v3290_v30 }
 0x2f4   : > { %v2957_v59 = vadd.f32 %v2862_v26, %v2637_v10 }
 0x2f5   : > { %3376 = vst [vmem:[%s4523_s12 + $0x18] sm:$0xff] %v3291_v35 }
 0x2f6   : > { %v3067_v6 = vadd.f32 %v4390_v39, %v2957_v59 }
 0x2f7   : > { %v2225_v51 = vpop.f32.mrf.mxu2 }
 0x2f8   : > { %v3139_v0 = vmul.f32 0.1, %v3067_v6  ;;  %v2318_v29 = vadd.f32 %v2225_v51, %v4268_v16  ;;  %v2545_v54 = vpop.f32.mrf.mxu3  ;;  %vm3103_vm7 = vcmp.ge.f32.partialorder %v3067_v6, 0.0 }
 0x2fa   : > { %v2638_v2 = vadd.f32 %v2545_v54, %v2318_v29  ;;  %v3293_v33 = vpop.f32.mrf.mxu1  ;;  %v2867_v20 = vpop.f32.mrf.mxu0  ;;  %v3175_v23 = vsel %vm3103_vm7, %v3067_v6, %v3139_v0 }
 0x2fb   : > { %v3294_v17 = vadd.f32 %v4517_v24, %v3293_v33  ;;  %v3200_v12 = vpack.c.bf16 %v3175_v23, %v3174_v37 }
 0x2fc   : > { %v2958_v63 = vadd.f32 %v2865_v52, %v2638_v2 }
 0x2fd   : > { %3377 = vst [vmem:[%s4523_s12 + $0x20] sm:$0xff] %v3294_v17  ;;  %3332 = vmatmul.bf16.gmra.mxu1 %v3200_v12 }
 0x2fe   : > { %v3068_v13 = vadd.f32 %v4390_v39, %v2958_v63 }
 0x2ff   : > { %v2227_v58 = vpop.f32.mrf.mxu2 }
 0x300   : > { %v2319_v46 = vadd.f32 %v2227_v58, %v1999_v4  ;;  %v2547_v16 = vpop.f32.mrf.mxu3  ;;  %v3140_v19 = vmul.f32 0.1, %v3068_v13  ;;  %vm3104_vm8 = vcmp.ge.f32.partialorder %v3068_v13, 0.0 }
 0x302   : > { %v2639_v60 = vadd.f32 %v2547_v16, %v2319_v46  ;;  %v3295_v50 = vpop.f32.mrf.mxu1  ;;  %v2870_v28 = vpop.f32.mrf.mxu0  ;;  %v3176_v22 = vsel %vm3104_vm8, %v3068_v13, %v3140_v19 }
 0x303   : > { %v3296_v40 = vadd.f32 %v4517_v24, %v3295_v50 }
 0x304   : > { %v2959_v42 = vadd.f32 %v2867_v20, %v2639_v60  ;;  %v2003_v20 = vadd.f32 %v4301_v56, %v4313_v38 }
 0x305   : > { %3378 = vst [vmem:[%s4523_s12 + $0x28] sm:$0xff] %v3296_v40 }
 0x306   : > { %v3069_v45 = vadd.f32 %v4390_v39, %v2959_v42 }
 0x307   : > { %v2230_v8 = vpop.f32.mrf.mxu2 }
 0x308   : > { %v3141_v47 = vmul.f32 0.1, %v3069_v45  ;;  %v2320_v27 = vadd.f32 %v2230_v8, %v4286_v1  ;;  %v2550_v5 = vpop.f32.mrf.mxu3  ;;  %vm3105_vm9 = vcmp.ge.f32.partialorder %v3069_v45, 0.0 }
 0x30a   : > { %v2640_v7 = vadd.f32 %v2550_v5, %v2320_v27  ;;  %v3298_v44 = vpop.f32.mrf.mxu1  ;;  %v2872_v61 = vpop.f32.mrf.mxu0  ;;  %v3177_v26 = vsel %vm3105_vm9, %v3069_v45, %v3141_v47  ;;  %v2005_v5 = vadd.f32 %v4318_v9, %v4330_v3 }
 0x30b   : > { %v3299_v34 = vadd.f32 %v4517_v24, %v3298_v44  ;;  %v3201_v57 = vpack.c.bf16 %v3177_v26, %v3176_v22 }
 0x30c   : > { %v2960_v11 = vadd.f32 %v2870_v28, %v2640_v7 }
 0x30d   : > { %3379 = vst [vmem:[%s4523_s12 + $0x30] sm:$0xff] %v3299_v34  ;;  %3337 = vmatmul.bf16.gmra.mxu1 %v3201_v57 }
 0x30e   : > { %v3070_v31 = vadd.f32 %v4390_v39, %v2960_v11 }
 0x30f   : > { %v2232_v21 = vpop.f32.mrf.mxu2 }
 0x310   : > { %v2321_v41 = vadd.f32 %v2232_v21, %v2001_v25  ;;  %v2552_v1 = vpop.f32.mrf.mxu3  ;;  %v3142_v52 = vmul.f32 0.1, %v3070_v31  ;;  %vm3106_vm10 = vcmp.ge.f32.partialorder %v3070_v31, 0.0 }
 0x312   : > { %v2641_v15 = vadd.f32 %v2552_v1, %v2321_v41  ;;  %v3300_v53 = vpop.f32.mrf.mxu1  ;;  %v2875_v36 = vpop.f32.mrf.mxu0  ;;  %v3178_v29 = vsel %vm3106_vm10, %v3070_v31, %v3142_v52 }
 0x313   : > { %v3301_v10 = vadd.f32 %v4517_v24, %v3300_v53 }
 0x314   : > { %v2961_v30 = vadd.f32 %v2872_v61, %v2641_v15 }
 0x315   : > { %3380 = vst [vmem:[%s4523_s12 + $0x38] sm:$0xff] %v3301_v10 }
 0x316   : > { %v3071_v35 = vadd.f32 %v4390_v39, %v2961_v30 }
 0x317   : > { %v2235_v59 = vpop.f32.mrf.mxu2 }
 0x318   : > { %v3143_v18 = vmul.f32 0.1, %v3071_v35  ;;  %v2322_v32 = vadd.f32 %v2235_v59, %v4306_v43  ;;  %v2555_v14 = vpop.f32.mrf.mxu3  ;;  %vm3107_vm11 = vcmp.ge.f32.partialorder %v3071_v35, 0.0  ;;  %v4654_v59 = vld [vmem:[#allocation4_spill] sm:$0xff] }
 0x31a   : > { %v2642_v6 = vadd.f32 %v2555_v14, %v2322_v32  ;;  %v3303_v51 = vpop.f32.mrf.mxu1  ;;  %v2877_v0 = vpop.f32.mrf.mxu0  ;;  %v3179_v54 = vsel %vm3107_vm11, %v3071_v35, %v3143_v18  ;;  %v4655_v18 = vld [vmem:[#allocation3_spill] sm:$0xff] }
 0x31b   : > { %v3304_v2 = vadd.f32 %v4517_v24, %v3303_v51  ;;  %v3202_v33 = vpack.c.bf16 %v3179_v54, %v3178_v29  ;;  %v2007_v32 = vadd.f32 %v4655_v18, %v4654_v59 }
 0x31c   : > { %v2962_v37 = vadd.f32 %v2875_v36, %v2642_v6 }
 0x31d   : > { %3381 = vst [vmem:[%s4523_s12 + $0x40] sm:$0xff] %v3304_v2  ;;  %3342 = vmatmul.bf16.gmra.mxu1 %v3202_v33 }
 0x31e   : > { %v3072_v12 = vadd.f32 %v4390_v39, %v2962_v37 }
 0x31f   : > { %v2237_v23 = vpop.f32.mrf.mxu2 }
 0x320   : > { %v2323_v17 = vadd.f32 %v2237_v23, %v2003_v20  ;;  %v2557_v43 = vpop.f32.mrf.mxu3  ;;  %v3144_v13 = vmul.f32 0.1, %v3072_v12  ;;  %vm3108_vm12 = vcmp.ge.f32.partialorder %v3072_v12, 0.0 }
 0x322   : > { %v2643_v4 = vadd.f32 %v2557_v43, %v2323_v17  ;;  %v3305_v63 = vpop.f32.mrf.mxu1  ;;  %v2880_v58 = vpop.f32.mrf.mxu0  ;;  %v3180_v45 = vsel %vm3108_vm12, %v3072_v12, %v3144_v13 }
 0x323   : > { %v3306_v46 = vadd.f32 %v4517_v24, %v3305_v63 }
 0x324   : > { %v2963_v16 = vadd.f32 %v2877_v0, %v2643_v4 }
 0x325   : > { %3382 = vst [vmem:[%s4523_s12 + $0x48] sm:$0xff] %v3306_v46 }
 0x326   : > { %v3073_v60 = vadd.f32 %v4390_v39, %v2963_v16 }
 0x327   : > { %v2240_v50 = vpop.f32.mrf.mxu2 }
 0x328   : > { %v3145_v56 = vmul.f32 0.1, %v3073_v60  ;;  %v2324_v38 = vadd.f32 %v2240_v50, %v4323_v62  ;;  %v2560_v28 = vpop.f32.mrf.mxu3  ;;  %vm3109_vm13 = vcmp.ge.f32.partialorder %v3073_v60, 0.0  ;;  %v4656_v50 = vld [vmem:[#allocation6_spill] sm:$0xff] }
 0x32a   : > { %v2644_v40 = vadd.f32 %v2560_v28, %v2324_v38  ;;  %v3308_v42 = vpop.f32.mrf.mxu1  ;;  %v2882_v19 = vpop.f32.mrf.mxu0  ;;  %v3181_v8 = vsel %vm3109_vm13, %v3073_v60, %v3145_v56  ;;  %v4657_v56 = vld [vmem:[#allocation5_spill] sm:$0xff] }
 0x32b   : > { %v3309_v47 = vadd.f32 %v4517_v24, %v3308_v42  ;;  %v3203_v27 = vpack.c.bf16 %v3181_v8, %v3180_v45 }
 0x32c   : > { %v2964_v7 = vadd.f32 %v2880_v58, %v2644_v40 }
 0x32d   : > { %3383 = vst [vmem:[%s4523_s12 + $0x50] sm:$0xff] %v3309_v47  ;;  %3347 = vmatmul.bf16.gmra.mxu1 %v3203_v27 }
 0x32e   : > { %v3074_v22 = vadd.f32 %v4390_v39, %v2964_v7 }
 0x32f   : > { %v2242_v44 = vpop.f32.mrf.mxu2 }
 0x330   : > { %v2325_v61 = vadd.f32 %v2242_v44, %v2005_v5  ;;  %v2562_v62 = vpop.f32.mrf.mxu3  ;;  %v3146_v21 = vmul.f32 0.1, %v3074_v22  ;;  %vm3110_vm14 = vcmp.ge.f32.partialorder %v3074_v22, 0.0 }
 0x332   : > { %v2645_v26 = vadd.f32 %v2562_v62, %v2325_v61  ;;  %v3310_v34 = vpop.f32.mrf.mxu1  ;;  %v2885_v57 = vpop.f32.mrf.mxu0  ;;  %v3182_v36 = vsel %vm3110_vm14, %v3074_v22, %v3146_v21  ;;  %v4658_v22 = vld [vmem:[#allocation7_spill] sm:$0xff] }
 0x333   : > { %v3311_v25 = vadd.f32 %v4517_v24, %v3310_v34 }
 0x334   : > { %v2965_v11 = vadd.f32 %v2882_v19, %v2645_v26  ;;  %v3697_v19 = vld [vmem:[%s4646_s3] ss:$0 sm:$0xff] }
 0x335   : > { %3384 = vst [vmem:[%s4523_s12 + $0x58] sm:$0xff] %v3311_v25 }
 0x336   : > { %v3075_v41 = vadd.f32 %v4390_v39, %v2965_v11 }
 0x337   : > { %v2245_v1 = vpop.f32.mrf.mxu2 }
 0x338   : > { %v3147_v9 = vmul.f32 0.1, %v3075_v41  ;;  %v2326_v3 = vadd.f32 %v2245_v1, %v4343_v48  ;;  %v2565_v31 = vpop.f32.mrf.mxu3  ;;  %vm3111_vm15 = vcmp.ge.f32.partialorder %v3075_v41, 0.0 }
 0x33a   : > { %v2646_v15 = vadd.f32 %v2565_v31, %v2326_v3  ;;  %v3313_v53 = vpop.f32.mrf.mxu1  ;;  %v3183_v10 = vsel %vm3111_vm15, %v3075_v41, %v3147_v9  ;;  %v2887_v52 = vpop.f32.mrf.mxu0  ;;  %v4659_v3 = vld [vmem:[#allocation8_spill] sm:$0xff] }
 0x33b   : > { %v3314_v30 = vadd.f32 %v4517_v24, %v3313_v53  ;;  %v3204_v35 = vpack.c.bf16 %v3183_v10, %v3182_v36  ;;  %v2011_v31 = vadd.f32 %v4506_v55, %v4659_v3 }
 0x33c   : > { %v2966_v14 = vadd.f32 %v2885_v57, %v2646_v15 }
 0x33d   : > { %3385 = vst [vmem:[%s4523_s12 + $0x60] sm:$0xff] %v3314_v30  ;;  %3352 = vmatmul.bf16.gmra.mxu1 %v3204_v35 }
 0x33e   : > { %v3076_v0 = vadd.f32 %v4390_v39, %v2966_v14 }
 0x33f   : > { %v2247_v6 = vpop.f32.mrf.mxu2 }
 0x340   : > { %v2327_v51 = vadd.f32 %v2247_v6, %v2007_v32  ;;  %v2567_v48 = vpop.f32.mrf.mxu3  ;;  %v3148_v37 = vmul.f32 0.1, %v3076_v0  ;;  %vm3112_vm0 = vcmp.ge.f32.partialorder %v3076_v0, 0.0 }
 0x342   : > { %v2647_v29 = vadd.f32 %v2567_v48, %v2327_v51  ;;  %v3315_v54 = vpop.f32.mrf.mxu1  ;;  %v2890_v20 = vpop.f32.mrf.mxu0  ;;  %v3184_v46 = vsel %vm3112_vm0, %v3076_v0, %v3148_v37 }
 0x343   : > { %v3316_v2 = vadd.f32 %v4517_v24, %v3315_v54 }
 0x344   : > { %v2967_v33 = vadd.f32 %v2887_v52, %v2647_v29 }
 0x345   : > { %3386 = vst [vmem:[%s4523_s12 + $0x68] sm:$0xff] %v3316_v2 }
 0x346   : > { %v3077_v23 = vadd.f32 %v4390_v39, %v2967_v33  ;;  %v2009_v39 = vadd.f32 %v4657_v56, %v4656_v50 }
 0x347   : > { %v2250_v17 = vpop.f32.mrf.mxu2 }
 0x348   : > { %v3149_v43 = vmul.f32 0.1, %v3077_v23  ;;  %v2328_v12 = vadd.f32 %v2250_v17, %v4358_v49  ;;  %v2570_v4 = vpop.f32.mrf.mxu3  ;;  %vm3113_vm2 = vcmp.ge.f32.partialorder %v3077_v23, 0.0 }
 0x34a   : > { %v2648_v63 = vadd.f32 %v2570_v4, %v2328_v12  ;;  %v3318_v58 = vpop.f32.mrf.mxu1  ;;  %v3185_v16 = vsel %vm3113_vm2, %v3077_v23, %v3149_v43  ;;  %v2892_v28 = vpop.f32.mrf.mxu0 }
 0x34b   : > { %v3319_v13 = vadd.f32 %v4517_v24, %v3318_v58  ;;  %v3205_v60 = vpack.c.bf16 %v3185_v16, %v3184_v46 }
 0x34c   : > { %v2968_v38 = vadd.f32 %v2890_v20, %v2648_v63 }
 0x34d   : > { %3387 = vst [vmem:[%s4523_s12 + $0x70] sm:$0xff] %v3319_v13  ;;  %3357 = vmatmul.bf16.gmra.mxu1 %v3205_v60 }
 0x34e   : > { %v3078_v45 = vadd.f32 %v3697_v19, %v2968_v38 }
 0x34f   : > { %v2252_v40 = vpop.f32.mrf.mxu2 }
 0x350   : > { %v2329_v42 = vadd.f32 %v2252_v40, %v2009_v39  ;;  %v2572_v49 = vpop.f32.mrf.mxu3  ;;  %v3150_v7 = vmul.f32 0.1, %v3078_v45  ;;  %vm3114_vm3 = vcmp.ge.f32.partialorder %v3078_v45, 0.0 }
 0x352   : > { %v2649_v8 = vadd.f32 %v2572_v49, %v2329_v42  ;;  %v3320_v47 = vpop.f32.mrf.mxu1  ;;  %v2895_v57 = vpop.f32.mrf.mxu0  ;;  %v3186_v21 = vsel %vm3114_vm3, %v3078_v45, %v3150_v7 }
 0x353   : > { %v3321_v27 = vadd.f32 %v4517_v24, %v3320_v47 }
 0x354   : > { %v2969_v5 = vadd.f32 %v2892_v28, %v2649_v8 }
 0x355   : > { %3388 = vst [vmem:[%s4523_s12 + $0x78] sm:$0xff] %v3321_v27 }
 0x356   : > { %v3079_v44 = vadd.f32 %v3697_v19, %v2969_v5 }
 0x357   : > { %v2255_v61 = vpop.f32.mrf.mxu2 }
 0x358   : > { %v3151_v62 = vmul.f32 0.1, %v3079_v44  ;;  %v2330_v26 = vadd.f32 %v2255_v61, %v4658_v22  ;;  %v2575_v34 = vpop.f32.mrf.mxu3  ;;  %vm3115_vm4 = vcmp.ge.f32.partialorder %v3079_v44, 0.0 }
 0x35a   : > { %v2650_v25 = vadd.f32 %v2575_v34, %v2330_v26  ;;  %v3323_v11 = vpop.f32.mrf.mxu1  ;;  %v3187_v41 = vsel %vm3115_vm4, %v3079_v44, %v3151_v62  ;;  %v2897_v59 = vpop.f32.mrf.mxu0 }
 0x35b   : > { %v3324_v1 = vadd.f32 %v4517_v24, %v3323_v11  ;;  %v3206_v9 = vpack.c.bf16 %v3187_v41, %v3186_v21 }
 0x35c   : > { %v2970_v15 = vadd.f32 %v2895_v57, %v2650_v25 }
 0x35d   : > { %3389 = vst [vmem:[%s4523_s12 + $0x80] sm:$0xff] %v3324_v1  ;;  %3362 = vmatmul.bf16.gmra.mxu1 %v3206_v9 }
 0x35e   : > { %v3080_v30 = vadd.f32 %v3697_v19, %v2970_v15 }
 0x35f   : > { %v2257_v53 = vpop.f32.mrf.mxu2 }
 0x360   : > { %v2331_v36 = vadd.f32 %v2257_v53, %v2011_v31  ;;  %v2577_v10 = vpop.f32.mrf.mxu3  ;;  %v3152_v14 = vmul.f32 0.1, %v3080_v30  ;;  %vm3116_vm1 = vcmp.ge.f32.partialorder %v3080_v30, 0.0 }
 0x362   : > { %v2651_v52 = vadd.f32 %v2577_v10, %v2331_v36  ;;  %v3325_v35 = vpop.f32.mrf.mxu1  ;;  %v3188_v48 = vsel %vm3116_vm1, %v3080_v30, %v3152_v14 }
 0x363   : > { %v3326_v18 = vadd.f32 %v4517_v24, %v3325_v35 }
 0x364   : > { %v2971_v32 = vadd.f32 %v2897_v59, %v2651_v52 }
 0x365   : > { %3390 = vst [vmem:[%s4523_s12 + $0x88] sm:$0xff] %v3326_v18 }
 0x366   : > { %v3081_v6 = vadd.f32 %v3697_v19, %v2971_v32 }
 0x368   : > { %v3153_v51 = vmul.f32 0.1, %v3081_v6  ;;  %vm3117_vm5 = vcmp.ge.f32.partialorder %v3081_v6, 0.0 }
 0x36a   : > { %v3328_v55 = vpop.f32.mrf.mxu1  ;;  %v3189_v0 = vsel %vm3117_vm5, %v3081_v6, %v3153_v51 }
 0x36b   : > { %v3329_v29 = vadd.f32 %v4517_v24, %v3328_v55  ;;  %v3207_v54 = vpack.c.bf16 %v3189_v0, %v3188_v48 }
 0x36d   : > { %3391 = vst [vmem:[%s4523_s12 + $0x90] sm:$0xff] %v3329_v29  ;;  %3367 = vmatmul.bf16.gmra.mxu1 %v3207_v54 }
 0x372   : > { %v3330_v2 = vpop.f32.mrf.mxu1 }
 0x373   : > { %v3331_v33 = vadd.f32 %v4517_v24, %v3330_v2 }
 0x375   : > { %3392 = vst [vmem:[%s4523_s12 + $0x98] sm:$0xff] %v3331_v33 }
 0x37a   : > { %v3333_v20 = vpop.f32.mrf.mxu1 }
 0x37b   : > { %v3334_v37 = vadd.f32 %v4517_v24, %v3333_v20 }
 0x37d   : > { %3393 = vst [vmem:[%s4523_s12 + $0xa0] sm:$0xff] %v3334_v37 }
 0x382   : > { %v3335_v23 = vpop.f32.mrf.mxu1 }
 0x383   : > { %v3336_v17 = vadd.f32 %v4517_v24, %v3335_v23 }
 0x385   : > { %3394 = vst [vmem:[%s4523_s12 + $0xa8] sm:$0xff] %v3336_v17 }
 0x38a   : > { %v3338_v43 = vpop.f32.mrf.mxu1 }
 0x38b   : > { %v3339_v12 = vadd.f32 %v4517_v24, %v3338_v43 }
 0x38d   : > { %3395 = vst [vmem:[%s4523_s12 + $0xb0] sm:$0xff] %v3339_v12 }
 0x392   : > { %v3340_v4 = vpop.f32.mrf.mxu1 }
 0x393   : > { %v3341_v63 = vadd.f32 %v4517_v24, %v3340_v4 }
 0x395   : > { %3396 = vst [vmem:[%s4523_s12 + $0xb8] sm:$0xff] %v3341_v63 }
 0x39a   : > { %v3343_v58 = vpop.f32.mrf.mxu1 }
 0x39b   : > { %v3344_v46 = vadd.f32 %v4517_v24, %v3343_v58 }
 0x39d   : > { %3397 = vst [vmem:[%s4523_s12 + $0xc0] sm:$0xff] %v3344_v46 }
 0x3a2   : > { %v3345_v16 = vpop.f32.mrf.mxu1 }
 0x3a3   : > { %v3346_v13 = vadd.f32 %v4517_v24, %v3345_v16 }
 0x3a5   : > { %3398 = vst [vmem:[%s4523_s12 + $0xc8] sm:$0xff] %v3346_v13 }
 0x3aa   : > { %v3348_v60 = vpop.f32.mrf.mxu1 }
 0x3ab   : > { %v3349_v50 = vadd.f32 %v4517_v24, %v3348_v60 }
 0x3ad   : > { %3399 = vst [vmem:[%s4523_s12 + $0xd0] sm:$0xff] %v3349_v50 }
 0x3b2   : > { %v3350_v56 = vpop.f32.mrf.mxu1 }
 0x3b3   : > { %v3351_v39 = vadd.f32 %v4517_v24, %v3350_v56 }
 0x3b5   : > { %3400 = vst [vmem:[%s4523_s12 + $0xd8] sm:$0xff] %v3351_v39 }
 0x3ba   : > { %v3353_v38 = vpop.f32.mrf.mxu1 }
 0x3bb   : > { %v3354_v28 = vadd.f32 %v4517_v24, %v3353_v38 }
 0x3bd   : > { %3401 = vst [vmem:[%s4523_s12 + $0xe0] sm:$0xff] %v3354_v28 }
 0x3c2   : > { %v3355_v40 = vpop.f32.mrf.mxu1 }
 0x3c3   : > { %v3356_v42 = vadd.f32 %v4517_v24, %v3355_v40 }
 0x3c5   : > { %3402 = vst [vmem:[%s4523_s12 + $0xe8] sm:$0xff] %v3356_v42 }
 0x3ca   : > { %v3358_v49 = vpop.f32.mrf.mxu1 }
 0x3cb   : > { %v3359_v19 = vadd.f32 %v4517_v24, %v3358_v49 }
 0x3cd   : > { %3403 = vst [vmem:[%s4523_s12 + $0xf0] sm:$0xff] %v3359_v19 }
 0x3d2   : > { %v3360_v45 = vpop.f32.mrf.mxu1 }
 0x3d3   : > { %v3361_v8 = vadd.f32 %v4517_v24, %v3360_v45 }
 0x3d5   : > { %3404 = vst [vmem:[%s4523_s12 + $0xf8] sm:$0xff] %v3361_v8 }
 0x3da   : > { %v3363_v47 = vpop.f32.mrf.mxu1 }
 0x3db   : > { %v3364_v27 = vadd.f32 %v4517_v24, %v3363_v47 }
 0x3dd   : > { %3405 = vst [vmem:[%s4523_s12 + $0x100] sm:$0xff] %v3364_v27 }
 0x3e2   : > { %v3365_v5 = vpop.f32.mrf.mxu1 }
 0x3e3   : > { %v3366_v7 = vadd.f32 %v4517_v24, %v3365_v5 }
 0x3e5   : > { %3406 = vst [vmem:[%s4523_s12 + $0x108] sm:$0xff] %v3366_v7 }
 0x3ea   : > { %v3368_v44 = vpop.f32.mrf.mxu1 }
 0x3eb   : > { %v3369_v61 = vadd.f32 %v4517_v24, %v3368_v44 }
 0x3ed   : > { %3407 = vst [vmem:[%s4523_s12 + $0x110] sm:$0xff] %v3369_v61 }
 0x3f2   : > { %v3370_v62 = vpop.f32.mrf.mxu1 }
 0x3f3   : > { %v3371_v22 = vadd.f32 %v4517_v24, %v3370_v62 }
 0x3f5   : > { %3408 = vst [vmem:[%s4523_s12 + $0x118] sm:$0xff] %v3371_v22 }
 0x3f6 PF: > { %s14_s15 = sadd.s32 1, %s3704_s15  }
 0x3f7   : > { %p11_p4 = scmp.ge.s32.totalorder %s14_s15, 4  }
 0x3f9   :  { %13 = sbr.rel (!%p11_p4) target bundleno = 1 (0x1), region = 74 }

</bundles_post_ra>
